<compile_context>
chip_gen: v6e
topology: v6e:2x2x1
jax: 0.10.0
libtpu: 0.0.40
codegen_flags: <defaults>
</compile_context>

<pallas_src>
import jax
import jax.numpy as jnp
import numpy as np
from jax.experimental import pallas as pl
from jax.experimental.pallas import tpu as pltpu

EMBEDDING_DIM = 50
RNN_HIDDEN_DIM = 50
VOCAB_SIZE = 32
UNK_IDX = 0  # index of '<unk>' in the synthetic vocabulary


# ---------------------------------------------------------------------------
# Pallas kernel: bidirectional single-layer LSTM over one sentence (batch=1).
# ---------------------------------------------------------------------------
def bilstm_kernel(x_ref, wih_ref, whh_f_ref, whh_b_ref, b_ref,
                  out_ref, xwf_ref, xwb_ref):
    T = x_ref.shape[0]
    H = RNN_HIDDEN_DIM
    G = 4 * H

    # Hoisted input projection for BOTH directions, bias folded in:
    #   (T, E) @ (E, 8H) + (1, 8H)  ->  (T, 8H), done once before the loop.
    xw = (jnp.dot(x_ref[...], wih_ref[...], preferred_element_type=jnp.float32)
          + b_ref[...])
    xwf_ref[...] = xw[:, :G]      # forward-direction gate pre-projections
    xwb_ref[...] = xw[:, G:]      # backward-direction gate pre-projections

    whh_f = whh_f_ref[...]        # (H, 4H), gate order i|f|g|o
    whh_b = whh_b_ref[...]        # (H, 4H)

    def cell(pre, c):
        # pre: (1, 4H) pre-activations in PyTorch gate order i, f, g, o.
        i = jax.nn.sigmoid(pre[:, 0:H])
        f = jax.nn.sigmoid(pre[:, H:2 * H])
        g = jnp.tanh(pre[:, 2 * H:3 * H])
        o = jax.nn.sigmoid(pre[:, 3 * H:4 * H])
        c_new = f * c + i * g
        h_new = o * jnp.tanh(c_new)
        return h_new, c_new

    def body(t, carry):
        h_f, c_f, h_b, c_b = carry
        tb = T - 1 - t

        # One fused (1, H) @ (H, 4H) recurrent matmul per direction per step.
        pre_f = xwf_ref[pl.ds(t, 1), :] + jnp.dot(
            h_f, whh_f, preferred_element_type=jnp.float32)
        pre_b = xwb_ref[pl.ds(tb, 1), :] + jnp.dot(
            h_b, whh_b, preferred_element_type=jnp.float32)

        h_f, c_f = cell(pre_f, c_f)
        h_b, c_b = cell(pre_b, c_b)

        # Combined output slab: fwd in lanes [0:H], bwd in lanes [H:2H].
        out_ref[pl.ds(t, 1), 0:H] = h_f
        out_ref[pl.ds(tb, 1), H:2 * H] = h_b
        return h_f, c_f, h_b, c_b

    zeros = jnp.zeros((1, H), jnp.float32)
    jax.lax.fori_loop(0, T, body, (zeros, zeros, zeros, zeros), unroll=True)


def bilstm_pallas(x, params):
    """x: (T, E) f32 -> (T, 2H) f32 (fwd hidden | bwd hidden)."""
    T, E = x.shape
    H = RNN_HIDDEN_DIM
    G = 4 * H
    full = lambda shape: pl.BlockSpec(shape, lambda i: (0,) * len(shape))
    return pl.pallas_call(
        bilstm_kernel,
        out_shape=jax.ShapeDtypeStruct((T, 2 * H), jnp.float32),
        grid=(1,),
        in_specs=[
            full((T, E)),            # embedded input
            full((E, 2 * G)),        # W_ih (fwd | bwd), pre-transposed
            full((H, G)),            # W_hh forward
            full((H, G)),            # W_hh backward
            full((1, 2 * G)),        # b_ih + b_hh (fwd | bwd)
        ],
        out_specs=full((T, 2 * H)),
        scratch_shapes=[
            pltpu.VMEM((T, G), jnp.float32),   # hoisted fwd input projection
            pltpu.VMEM((T, G), jnp.float32),   # hoisted bwd input projection
        ],
        compiler_params=pltpu.CompilerParams(
            dimension_semantics=("arbitrary",)),
    )(x, params["wih"], params["whh_f"], params["whh_b"], params["b"])


# ---------------------------------------------------------------------------
# Glue: drop_words, embedding lookup, [1:-1] slice.
# ---------------------------------------------------------------------------
def drop_words(word_ids, word_dropout, key):
    """word_ids: (T, 1) int32. Never drops the first/last (boundary) token."""
    T = word_ids.shape[0]
    pos = jnp.arange(T)
    drop = (jax.random.uniform(key, (T,)) < word_dropout) & (pos > 0) & (pos < T - 1)
    return jnp.where(drop[:, None], jnp.int32(UNK_IDX), word_ids)


def sentence_encoder_forward(params, word_ids, word_dropout, key):
    ids = drop_words(word_ids, word_dropout, key)           # (T, 1)
    embedded = params["embedding"][ids[:, 0]]               # (T, E) gather glue
    hss = bilstm_pallas(embedded.astype(jnp.float32), params)   # (T, 2H)
    return hss[1:-1, None, :]                               # (T-2, 1, 2H)


# ---------------------------------------------------------------------------
# Deterministic parameter init (stacked layout, gate order i|f|g|o per dir).
# ---------------------------------------------------------------------------
def init_params(key):
    H, E = RNN_HIDDEN_DIM, EMBEDDING_DIM
    G = 4 * H
    bound = 1.0 / np.sqrt(H)
    ks = jax.random.split(key, 10)
    u = lambda k, shape: jax.random.uniform(k, shape, jnp.float32, -bound, bound)
    wih_f = u(ks[1], (E, G))
    wih_b = u(ks[2], (E, G))
    b_f = u(ks[3], (1, G)) + u(ks[4], (1, G))   # b_ih + b_hh (forward)
    b_b = u(ks[5], (1, G)) + u(ks[6], (1, G))   # b_ih + b_hh (backward)
    return {
        "embedding": jax.random.normal(ks[0], (VOCAB_SIZE, E), jnp.float32),
        "wih": jnp.concatenate([wih_f, wih_b], axis=1),   # (E, 8H)
        "whh_f": u(ks[7], (H, G)),                        # (H, 4H)
        "whh_b": u(ks[8], (H, G)),                        # (H, 4H)
        "b": jnp.concatenate([b_f, b_b], axis=1),         # (1, 8H)
    }


# ---------------------------------------------------------------------------
# Pure-JAX reference for correctness checking.
# ---------------------------------------------------------------------------
def _lstm_ref(x, wih, whh, b):
    """x: (T, E); wih: (E, 4H); whh: (H, 4H); b: (4H,). Returns (T, H)."""
    H = RNN_HIDDEN_DIM
    xw = x @ wih + b  # (T, 4H)

    def step(carry, xw_t):
        h, c = carry
        pre = xw_t + h @ whh
        i = jax.nn.sigmoid(pre[0:H])
        f = jax.nn.sigmoid(pre[H:2 * H])
        g = jnp.tanh(pre[2 * H:3 * H])
        o = jax.nn.sigmoid(pre[3 * H:4 * H])
        c = f * c + i * g
        h = o * jnp.tanh(c)
        return (h, c), h

    init = (jnp.zeros((H,), jnp.float32), jnp.zeros((H,), jnp.float32))
    _, hs = jax.lax.scan(step, init, xw)
    return hs


def sentence_encoder_ref(params, word_ids, word_dropout, key):
    ids = drop_words(word_ids, word_dropout, key)
    x = params["embedding"][ids[:, 0]].astype(jnp.float32)
    G = 4 * RNN_HIDDEN_DIM
    fwd = _lstm_ref(x, params["wih"][:, :G], params["whh_f"], params["b"][0, :G])
    bwd = _lstm_ref(x[::-1], params["wih"][:, G:], params["whh_b"],
                    params["b"][0, G:])[::-1]
    hss = jnp.concatenate([fwd, bwd], axis=-1)
    return hss[1:-1, None, :]


if __name__ == "__main__":
    key = jax.random.PRNGKey(0)
    k_param, k_ids, k_drop = jax.random.split(key, 3)

    params = init_params(k_param)

    T = 8  # sentence length including boundary tokens
    word_ids = jax.random.randint(k_ids, (T, 1), 0, VOCAB_SIZE, dtype=jnp.int32)
    word_dropout = 0.0  # deterministic run (no word dropout)

    out = sentence_encoder_forward(params, word_ids, word_dropout, k_drop)
    out = jax.block_until_ready(out)

    ref = sentence_encoder_ref(params, word_ids, word_dropout, k_drop)
    assert out.shape == (T - 2, 1, 2 * RNN_HIDDEN_DIM), out.shape
    np.testing.assert_allclose(np.asarray(out), np.asarray(ref),
                               rtol=1e-4, atol=1e-5)
    print("KERNEL_OK")
</pallas_src>

<mosaic_0001>
module attributes {stable_mosaic.version = 11 : i64} {
  func.func @bilstm_kernel(%arg0: i32, %arg1: memref<8x50xf32, #tpu.memory_space<vmem>>, %arg2: memref<50x400xf32, #tpu.memory_space<vmem>>, %arg3: memref<50x200xf32, #tpu.memory_space<vmem>>, %arg4: memref<50x200xf32, #tpu.memory_space<vmem>>, %arg5: memref<1x400xf32, #tpu.memory_space<vmem>>, %arg6: memref<8x100xf32, #tpu.memory_space<vmem>>, %arg7: memref<8x200xf32, #tpu.memory_space<vmem>>, %arg8: memref<8x200xf32, #tpu.memory_space<vmem>>) attributes {dimension_semantics = [#tpu.dimension_semantics<arbitrary>], iteration_bounds = array<i64: 1>, scalar_prefetch = 0 : i64, scratch_operands = 2 : i64, tpu.core_type = #tpu.core_type<tc>, window_params = [{pipeline_mode = #tpu.pipeline_mode<synchronous>, transform_indices = @transform_0, window_bounds = array<i64: 8, 50>}, {pipeline_mode = #tpu.pipeline_mode<synchronous>, transform_indices = @transform_1, window_bounds = array<i64: 50, 400>}, {pipeline_mode = #tpu.pipeline_mode<synchronous>, transform_indices = @transform_2, window_bounds = array<i64: 50, 200>}, {pipeline_mode = #tpu.pipeline_mode<synchronous>, transform_indices = @transform_3, window_bounds = array<i64: 50, 200>}, {pipeline_mode = #tpu.pipeline_mode<synchronous>, transform_indices = @transform_4, window_bounds = array<i64: 1, 400>}, {pipeline_mode = #tpu.pipeline_mode<synchronous>, transform_indices = @transform_5, window_bounds = array<i64: 8, 100>}]} {
    %c0 = arith.constant 0 : index
    %c0_0 = arith.constant 0 : index
    %0 = vector.load %arg1[%c0, %c0_0] : memref<8x50xf32, #tpu.memory_space<vmem>>, vector<8x50xf32>
    %c0_1 = arith.constant 0 : index
    %c0_2 = arith.constant 0 : index
    %1 = vector.load %arg2[%c0_1, %c0_2] : memref<50x400xf32, #tpu.memory_space<vmem>>, vector<50x400xf32>
    %cst = arith.constant dense<0.000000e+00> : vector<8x400xf32>
    %2 = tpu.matmul %0, %1, %cst {dimension_numbers = #tpu.dot_dimension_numbers<[1], [0], [0], [1], [0, 0, 1, 1], [], []>} : vector<8x50xf32>, vector<50x400xf32>, vector<8x400xf32> -> vector<8x400xf32>
    %c0_3 = arith.constant 0 : index
    %c0_4 = arith.constant 0 : index
    %3 = vector.load %arg5[%c0_3, %c0_4] : memref<1x400xf32, #tpu.memory_space<vmem>>, vector<1x400xf32>
    %4 = vector.broadcast %3 : vector<1x400xf32> to vector<8x400xf32>
    %5 = arith.addf %2, %4 : vector<8x400xf32>
    %6 = vector.extract_strided_slice %5 {offsets = [0, 0], sizes = [8, 200], strides = [1, 1]} : vector<8x400xf32> to vector<8x200xf32>
    %c0_5 = arith.constant 0 : index
    %c0_6 = arith.constant 0 : index
    %7 = vector.load %arg7[%c0_5, %c0_6] : memref<8x200xf32, #tpu.memory_space<vmem>>, vector<8x200xf32>
    tpu.vector_store %arg7[%c0_5, %c0_6], %6 {strides = array<i32>} : memref<8x200xf32, #tpu.memory_space<vmem>>, vector<8x200xf32>,
    %8 = vector.extract_strided_slice %5 {offsets = [0, 200], sizes = [8, 200], strides = [1, 1]} : vector<8x400xf32> to vector<8x200xf32>
    %c0_7 = arith.constant 0 : index
    %c0_8 = arith.constant 0 : index
    %9 = vector.load %arg8[%c0_7, %c0_8] : memref<8x200xf32, #tpu.memory_space<vmem>>, vector<8x200xf32>
    tpu.vector_store %arg8[%c0_7, %c0_8], %8 {strides = array<i32>} : memref<8x200xf32, #tpu.memory_space<vmem>>, vector<8x200xf32>,
    %c0_9 = arith.constant 0 : index
    %c0_10 = arith.constant 0 : index
    %10 = vector.load %arg3[%c0_9, %c0_10] : memref<50x200xf32, #tpu.memory_space<vmem>>, vector<50x200xf32>
    %c0_11 = arith.constant 0 : index
    %c0_12 = arith.constant 0 : index
    %11 = vector.load %arg4[%c0_11, %c0_12] : memref<50x200xf32, #tpu.memory_space<vmem>>, vector<50x200xf32>
    %cst_13 = arith.constant 0.000000e+00 : f32
    %12 = vector.broadcast %cst_13 : f32 to vector<1x50xf32>
    %c0_i32 = arith.constant 0 : i32
    %c7_i32 = arith.constant 7 : i32
    %13 = arith.subi %c7_i32, %c0_i32 : i32
    %14 = arith.index_cast %c0_i32 : i32 to index
    %c0_14 = arith.constant 0 : index
    %15 = vector.load %arg7[%14, %c0_14] : memref<8x200xf32, #tpu.memory_space<vmem>>, vector<1x200xf32>
    %cst_15 = arith.constant dense<0.000000e+00> : vector<1x200xf32>
    %16 = tpu.matmul %12, %10, %cst_15 {dimension_numbers = #tpu.dot_dimension_numbers<[1], [0], [0], [1], [0, 0, 1, 1], [], []>} : vector<1x50xf32>, vector<50x200xf32>, vector<1x200xf32> -> vector<1x200xf32>
    %17 = arith.addf %15, %16 : vector<1x200xf32>
    %18 = arith.index_cast %13 : i32 to index
    %c0_16 = arith.constant 0 : index
    %19 = vector.load %arg8[%18, %c0_16] : memref<8x200xf32, #tpu.memory_space<vmem>>, vector<1x200xf32>
    %cst_17 = arith.constant dense<0.000000e+00> : vector<1x200xf32>
    %20 = tpu.matmul %12, %11, %cst_17 {dimension_numbers = #tpu.dot_dimension_numbers<[1], [0], [0], [1], [0, 0, 1, 1], [], []>} : vector<1x50xf32>, vector<50x200xf32>, vector<1x200xf32> -> vector<1x200xf32>
    %21 = arith.addf %19, %20 : vector<1x200xf32>
    %22 = vector.extract_strided_slice %17 {offsets = [0, 0], sizes = [1, 50], strides = [1, 1]} : vector<1x200xf32> to vector<1x50xf32>
    %23 = arith.negf %22 : vector<1x50xf32>
    %24 = math.exp %23 : vector<1x50xf32>
    %cst_18 = arith.constant 1.000000e+00 : f32
    %25 = vector.broadcast %cst_18 : f32 to vector<1x50xf32>
    %26 = arith.addf %25, %24 : vector<1x50xf32>
    %27 = arith.divf %25, %26 : vector<1x50xf32>
    %28 = vector.extract_strided_slice %17 {offsets = [0, 50], sizes = [1, 50], strides = [1, 1]} : vector<1x200xf32> to vector<1x50xf32>
    %29 = arith.negf %28 : vector<1x50xf32>
    %30 = math.exp %29 : vector<1x50xf32>
    %cst_19 = arith.constant 1.000000e+00 : f32
    %31 = vector.broadcast %cst_19 : f32 to vector<1x50xf32>
    %32 = arith.addf %31, %30 : vector<1x50xf32>
    %33 = arith.divf %31, %32 : vector<1x50xf32>
    %34 = vector.extract_strided_slice %17 {offsets = [0, 100], sizes = [1, 50], strides = [1, 1]} : vector<1x200xf32> to vector<1x50xf32>
    %35 = math.tanh %34 : vector<1x50xf32>
    %36 = vector.extract_strided_slice %17 {offsets = [0, 150], sizes = [1, 50], strides = [1, 1]} : vector<1x200xf32> to vector<1x50xf32>
    %37 = arith.negf %36 : vector<1x50xf32>
    %38 = math.exp %37 : vector<1x50xf32>
    %cst_20 = arith.constant 1.000000e+00 : f32
    %39 = vector.broadcast %cst_20 : f32 to vector<1x50xf32>
    %40 = arith.addf %39, %38 : vector<1x50xf32>
    %41 = arith.divf %39, %40 : vector<1x50xf32>
    %42 = arith.mulf %33, %12 : vector<1x50xf32>
    %43 = arith.mulf %27, %35 : vector<1x50xf32>
    %44 = arith.addf %42, %43 : vector<1x50xf32>
    %45 = math.tanh %44 : vector<1x50xf32>
    %46 = arith.mulf %41, %45 : vector<1x50xf32>
    %47 = vector.extract_strided_slice %21 {offsets = [0, 0], sizes = [1, 50], strides = [1, 1]} : vector<1x200xf32> to vector<1x50xf32>
    %48 = arith.negf %47 : vector<1x50xf32>
    %49 = math.exp %48 : vector<1x50xf32>
    %cst_21 = arith.constant 1.000000e+00 : f32
    %50 = vector.broadcast %cst_21 : f32 to vector<1x50xf32>
    %51 = arith.addf %50, %49 : vector<1x50xf32>
    %52 = arith.divf %50, %51 : vector<1x50xf32>
    %53 = vector.extract_strided_slice %21 {offsets = [0, 50], sizes = [1, 50], strides = [1, 1]} : vector<1x200xf32> to vector<1x50xf32>
    %54 = arith.negf %53 : vector<1x50xf32>
    %55 = math.exp %54 : vector<1x50xf32>
    %cst_22 = arith.constant 1.000000e+00 : f32
    %56 = vector.broadcast %cst_22 : f32 to vector<1x50xf32>
    %57 = arith.addf %56, %55 : vector<1x50xf32>
    %58 = arith.divf %56, %57 : vector<1x50xf32>
    %59 = vector.extract_strided_slice %21 {offsets = [0, 100], sizes = [1, 50], strides = [1, 1]} : vector<1x200xf32> to vector<1x50xf32>
    %60 = math.tanh %59 : vector<1x50xf32>
    %61 = vector.extract_strided_slice %21 {offsets = [0, 150], sizes = [1, 50], strides = [1, 1]} : vector<1x200xf32> to vector<1x50xf32>
    %62 = arith.negf %61 : vector<1x50xf32>
    %63 = math.exp %62 : vector<1x50xf32>
    %cst_23 = arith.constant 1.000000e+00 : f32
    %64 = vector.broadcast %cst_23 : f32 to vector<1x50xf32>
    %65 = arith.addf %64, %63 : vector<1x50xf32>
    %66 = arith.divf %64, %65 : vector<1x50xf32>
    %67 = arith.mulf %58, %12 : vector<1x50xf32>
    %68 = arith.mulf %52, %60 : vector<1x50xf32>
    %69 = arith.addf %67, %68 : vector<1x50xf32>
    %70 = math.tanh %69 : vector<1x50xf32>
    %71 = arith.mulf %66, %70 : vector<1x50xf32>
    %72 = arith.index_cast %c0_i32 : i32 to index
    %c0_24 = arith.constant 0 : index
    %73 = vector.load %arg6[%72, %c0_24] : memref<8x100xf32, #tpu.memory_space<vmem>>, vector<1x50xf32>
    tpu.vector_store %arg6[%72, %c0_24], %46 {strides = array<i32>} : memref<8x100xf32, #tpu.memory_space<vmem>>, vector<1x50xf32>,
    %74 = arith.index_cast %13 : i32 to index
    %c50 = arith.constant 50 : index
    %75 = vector.load %arg6[%74, %c50] : memref<8x100xf32, #tpu.memory_space<vmem>>, vector<1x50xf32>
    tpu.vector_store %arg6[%74, %c50], %71 {strides = array<i32>} : memref<8x100xf32, #tpu.memory_space<vmem>>, vector<1x50xf32>,
    %c1_i32 = arith.constant 1 : i32
    %c7_i32_25 = arith.constant 7 : i32
    %76 = arith.subi %c7_i32_25, %c1_i32 : i32
    %77 = arith.index_cast %c1_i32 : i32 to index
    %c0_26 = arith.constant 0 : index
    %78 = vector.load %arg7[%77, %c0_26] : memref<8x200xf32, #tpu.memory_space<vmem>>, vector<1x200xf32>
    %cst_27 = arith.constant dense<0.000000e+00> : vector<1x200xf32>
    %79 = tpu.matmul %46, %10, %cst_27 {dimension_numbers = #tpu.dot_dimension_numbers<[1], [0], [0], [1], [0, 0, 1, 1], [], []>} : vector<1x50xf32>, vector<50x200xf32>, vector<1x200xf32> -> vector<1x200xf32>
    %80 = arith.addf %78, %79 : vector<1x200xf32>
    %81 = arith.index_cast %76 : i32 to index
    %c0_28 = arith.constant 0 : index
    %82 = vector.load %arg8[%81, %c0_28] : memref<8x200xf32, #tpu.memory_space<vmem>>, vector<1x200xf32>
    %cst_29 = arith.constant dense<0.000000e+00> : vector<1x200xf32>
    %83 = tpu.matmul %71, %11, %cst_29 {dimension_numbers = #tpu.dot_dimension_numbers<[1], [0], [0], [1], [0, 0, 1, 1], [], []>} : vector<1x50xf32>, vector<50x200xf32>, vector<1x200xf32> -> vector<1x200xf32>
    %84 = arith.addf %82, %83 : vector<1x200xf32>
    %85 = vector.extract_strided_slice %80 {offsets = [0, 0], sizes = [1, 50], strides = [1, 1]} : vector<1x200xf32> to vector<1x50xf32>
    %86 = arith.negf %85 : vector<1x50xf32>
    %87 = math.exp %86 : vector<1x50xf32>
    %cst_30 = arith.constant 1.000000e+00 : f32
    %88 = vector.broadcast %cst_30 : f32 to vector<1x50xf32>
    %89 = arith.addf %88, %87 : vector<1x50xf32>
    %90 = arith.divf %88, %89 : vector<1x50xf32>
    %91 = vector.extract_strided_slice %80 {offsets = [0, 50], sizes = [1, 50], strides = [1, 1]} : vector<1x200xf32> to vector<1x50xf32>
    %92 = arith.negf %91 : vector<1x50xf32>
    %93 = math.exp %92 : vector<1x50xf32>
    %cst_31 = arith.constant 1.000000e+00 : f32
    %94 = vector.broadcast %cst_31 : f32 to vector<1x50xf32>
    %95 = arith.addf %94, %93 : vector<1x50xf32>
    %96 = arith.divf %94, %95 : vector<1x50xf32>
    %97 = vector.extract_strided_slice %80 {offsets = [0, 100], sizes = [1, 50], strides = [1, 1]} : vector<1x200xf32> to vector<1x50xf32>
    %98 = math.tanh %97 : vector<1x50xf32>
    %99 = vector.extract_strided_slice %80 {offsets = [0, 150], sizes = [1, 50], strides = [1, 1]} : vector<1x200xf32> to vector<1x50xf32>
    %100 = arith.negf %99 : vector<1x50xf32>
    %101 = math.exp %100 : vector<1x50xf32>
    %cst_32 = arith.constant 1.000000e+00 : f32
    %102 = vector.broadcast %cst_32 : f32 to vector<1x50xf32>
    %103 = arith.addf %102, %101 : vector<1x50xf32>
    %104 = arith.divf %102, %103 : vector<1x50xf32>
    %105 = arith.mulf %96, %44 : vector<1x50xf32>
    %106 = arith.mulf %90, %98 : vector<1x50xf32>
    %107 = arith.addf %105, %106 : vector<1x50xf32>
    %108 = math.tanh %107 : vector<1x50xf32>
    %109 = arith.mulf %104, %108 : vector<1x50xf32>
    %110 = vector.extract_strided_slice %84 {offsets = [0, 0], sizes = [1, 50], strides = [1, 1]} : vector<1x200xf32> to vector<1x50xf32>
    %111 = arith.negf %110 : vector<1x50xf32>
    %112 = math.exp %111 : vector<1x50xf32>
    %cst_33 = arith.constant 1.000000e+00 : f32
    %113 = vector.broadcast %cst_33 : f32 to vector<1x50xf32>
    %114 = arith.addf %113, %112 : vector<1x50xf32>
    %115 = arith.divf %113, %114 : vector<1x50xf32>
    %116 = vector.extract_strided_slice %84 {offsets = [0, 50], sizes = [1, 50], strides = [1, 1]} : vector<1x200xf32> to vector<1x50xf32>
    %117 = arith.negf %116 : vector<1x50xf32>
    %118 = math.exp %117 : vector<1x50xf32>
    %cst_34 = arith.constant 1.000000e+00 : f32
    %119 = vector.broadcast %cst_34 : f32 to vector<1x50xf32>
    %120 = arith.addf %119, %118 : vector<1x50xf32>
    %121 = arith.divf %119, %120 : vector<1x50xf32>
    %122 = vector.extract_strided_slice %84 {offsets = [0, 100], sizes = [1, 50], strides = [1, 1]} : vector<1x200xf32> to vector<1x50xf32>
    %123 = math.tanh %122 : vector<1x50xf32>
    %124 = vector.extract_strided_slice %84 {offsets = [0, 150], sizes = [1, 50], strides = [1, 1]} : vector<1x200xf32> to vector<1x50xf32>
    %125 = arith.negf %124 : vector<1x50xf32>
    %126 = math.exp %125 : vector<1x50xf32>
    %cst_35 = arith.constant 1.000000e+00 : f32
    %127 = vector.broadcast %cst_35 : f32 to vector<1x50xf32>
    %128 = arith.addf %127, %126 : vector<1x50xf32>
    %129 = arith.divf %127, %128 : vector<1x50xf32>
    %130 = arith.mulf %121, %69 : vector<1x50xf32>
    %131 = arith.mulf %115, %123 : vector<1x50xf32>
    %132 = arith.addf %130, %131 : vector<1x50xf32>
    %133 = math.tanh %132 : vector<1x50xf32>
    %134 = arith.mulf %129, %133 : vector<1x50xf32>
    %135 = arith.index_cast %c1_i32 : i32 to index
    %c0_36 = arith.constant 0 : index
    %136 = vector.load %arg6[%135, %c0_36] : memref<8x100xf32, #tpu.memory_space<vmem>>, vector<1x50xf32>
    tpu.vector_store %arg6[%135, %c0_36], %109 {strides = array<i32>} : memref<8x100xf32, #tpu.memory_space<vmem>>, vector<1x50xf32>,
    %137 = arith.index_cast %76 : i32 to index
    %c50_37 = arith.constant 50 : index
    %138 = vector.load %arg6[%137, %c50_37] : memref<8x100xf32, #tpu.memory_space<vmem>>, vector<1x50xf32>
    tpu.vector_store %arg6[%137, %c50_37], %134 {strides = array<i32>} : memref<8x100xf32, #tpu.memory_space<vmem>>, vector<1x50xf32>,
    %c2_i32 = arith.constant 2 : i32
    %c7_i32_38 = arith.constant 7 : i32
    %139 = arith.subi %c7_i32_38, %c2_i32 : i32
    %140 = arith.index_cast %c2_i32 : i32 to index
    %c0_39 = arith.constant 0 : index
    %141 = vector.load %arg7[%140, %c0_39] : memref<8x200xf32, #tpu.memory_space<vmem>>, vector<1x200xf32>
    %cst_40 = arith.constant dense<0.000000e+00> : vector<1x200xf32>
    %142 = tpu.matmul %109, %10, %cst_40 {dimension_numbers = #tpu.dot_dimension_numbers<[1], [0], [0], [1], [0, 0, 1, 1], [], []>} : vector<1x50xf32>, vector<50x200xf32>, vector<1x200xf32> -> vector<1x200xf32>
    %143 = arith.addf %141, %142 : vector<1x200xf32>
    %144 = arith.index_cast %139 : i32 to index
    %c0_41 = arith.constant 0 : index
    %145 = vector.load %arg8[%144, %c0_41] : memref<8x200xf32, #tpu.memory_space<vmem>>, vector<1x200xf32>
    %cst_42 = arith.constant dense<0.000000e+00> : vector<1x200xf32>
    %146 = tpu.matmul %134, %11, %cst_42 {dimension_numbers = #tpu.dot_dimension_numbers<[1], [0], [0], [1], [0, 0, 1, 1], [], []>} : vector<1x50xf32>, vector<50x200xf32>, vector<1x200xf32> -> vector<1x200xf32>
    %147 = arith.addf %145, %146 : vector<1x200xf32>
    %148 = vector.extract_strided_slice %143 {offsets = [0, 0], sizes = [1, 50], strides = [1, 1]} : vector<1x200xf32> to vector<1x50xf32>
    %149 = arith.negf %148 : vector<1x50xf32>
    %150 = math.exp %149 : vector<1x50xf32>
    %cst_43 = arith.constant 1.000000e+00 : f32
    %151 = vector.broadcast %cst_43 : f32 to vector<1x50xf32>
    %152 = arith.addf %151, %150 : vector<1x50xf32>
    %153 = arith.divf %151, %152 : vector<1x50xf32>
    %154 = vector.extract_strided_slice %143 {offsets = [0, 50], sizes = [1, 50], strides = [1, 1]} : vector<1x200xf32> to vector<1x50xf32>
    %155 = arith.negf %154 : vector<1x50xf32>
    %156 = math.exp %155 : vector<1x50xf32>
    %cst_44 = arith.constant 1.000000e+00 : f32
    %157 = vector.broadcast %cst_44 : f32 to vector<1x50xf32>
    %158 = arith.addf %157, %156 : vector<1x50xf32>
    %159 = arith.divf %157, %158 : vector<1x50xf32>
    %160 = vector.extract_strided_slice %143 {offsets = [0, 100], sizes = [1, 50], strides = [1, 1]} : vector<1x200xf32> to vector<1x50xf32>
    %161 = math.tanh %160 : vector<1x50xf32>
    %162 = vector.extract_strided_slice %143 {offsets = [0, 150], sizes = [1, 50], strides = [1, 1]} : vector<1x200xf32> to vector<1x50xf32>
    %163 = arith.negf %162 : vector<1x50xf32>
    %164 = math.exp %163 : vector<1x50xf32>
    %cst_45 = arith.constant 1.000000e+00 : f32
    %165 = vector.broadcast %cst_45 : f32 to vector<1x50xf32>
    %166 = arith.addf %165, %164 : vector<1x50xf32>
    %167 = arith.divf %165, %166 : vector<1x50xf32>
    %168 = arith.mulf %159, %107 : vector<1x50xf32>
    %169 = arith.mulf %153, %161 : vector<1x50xf32>
    %170 = arith.addf %168, %169 : vector<1x50xf32>
    %171 = math.tanh %170 : vector<1x50xf32>
    %172 = arith.mulf %167, %171 : vector<1x50xf32>
    %173 = vector.extract_strided_slice %147 {offsets = [0, 0], sizes = [1, 50], strides = [1, 1]} : vector<1x200xf32> to vector<1x50xf32>
    %174 = arith.negf %173 : vector<1x50xf32>
    %175 = math.exp %174 : vector<1x50xf32>
    %cst_46 = arith.constant 1.000000e+00 : f32
    %176 = vector.broadcast %cst_46 : f32 to vector<1x50xf32>
    %177 = arith.addf %176, %175 : vector<1x50xf32>
    %178 = arith.divf %176, %177 : vector<1x50xf32>
    %179 = vector.extract_strided_slice %147 {offsets = [0, 50], sizes = [1, 50], strides = [1, 1]} : vector<1x200xf32> to vector<1x50xf32>
    %180 = arith.negf %179 : vector<1x50xf32>
    %181 = math.exp %180 : vector<1x50xf32>
    %cst_47 = arith.constant 1.000000e+00 : f32
    %182 = vector.broadcast %cst_47 : f32 to vector<1x50xf32>
    %183 = arith.addf %182, %181 : vector<1x50xf32>
    %184 = arith.divf %182, %183 : vector<1x50xf32>
    %185 = vector.extract_strided_slice %147 {offsets = [0, 100], sizes = [1, 50], strides = [1, 1]} : vector<1x200xf32> to vector<1x50xf32>
    %186 = math.tanh %185 : vector<1x50xf32>
    %187 = vector.extract_strided_slice %147 {offsets = [0, 150], sizes = [1, 50], strides = [1, 1]} : vector<1x200xf32> to vector<1x50xf32>
    %188 = arith.negf %187 : vector<1x50xf32>
    %189 = math.exp %188 : vector<1x50xf32>
    %cst_48 = arith.constant 1.000000e+00 : f32
    %190 = vector.broadcast %cst_48 : f32 to vector<1x50xf32>
    %191 = arith.addf %190, %189 : vector<1x50xf32>
    %192 = arith.divf %190, %191 : vector<1x50xf32>
    %193 = arith.mulf %184, %132 : vector<1x50xf32>
    %194 = arith.mulf %178, %186 : vector<1x50xf32>
    %195 = arith.addf %193, %194 : vector<1x50xf32>
    %196 = math.tanh %195 : vector<1x50xf32>
    %197 = arith.mulf %192, %196 : vector<1x50xf32>
    %198 = arith.index_cast %c2_i32 : i32 to index
    %c0_49 = arith.constant 0 : index
    %199 = vector.load %arg6[%198, %c0_49] : memref<8x100xf32, #tpu.memory_space<vmem>>, vector<1x50xf32>
    tpu.vector_store %arg6[%198, %c0_49], %172 {strides = array<i32>} : memref<8x100xf32, #tpu.memory_space<vmem>>, vector<1x50xf32>,
    %200 = arith.index_cast %139 : i32 to index
    %c50_50 = arith.constant 50 : index
    %201 = vector.load %arg6[%200, %c50_50] : memref<8x100xf32, #tpu.memory_space<vmem>>, vector<1x50xf32>
    tpu.vector_store %arg6[%200, %c50_50], %197 {strides = array<i32>} : memref<8x100xf32, #tpu.memory_space<vmem>>, vector<1x50xf32>,
    %c3_i32 = arith.constant 3 : i32
    %c7_i32_51 = arith.constant 7 : i32
    %202 = arith.subi %c7_i32_51, %c3_i32 : i32
    %203 = arith.index_cast %c3_i32 : i32 to index
    %c0_52 = arith.constant 0 : index
    %204 = vector.load %arg7[%203, %c0_52] : memref<8x200xf32, #tpu.memory_space<vmem>>, vector<1x200xf32>
    %cst_53 = arith.constant dense<0.000000e+00> : vector<1x200xf32>
    %205 = tpu.matmul %172, %10, %cst_53 {dimension_numbers = #tpu.dot_dimension_numbers<[1], [0], [0], [1], [0, 0, 1, 1], [], []>} : vector<1x50xf32>, vector<50x200xf32>, vector<1x200xf32> -> vector<1x200xf32>
    %206 = arith.addf %204, %205 : vector<1x200xf32>
    %207 = arith.index_cast %202 : i32 to index
    %c0_54 = arith.constant 0 : index
    %208 = vector.load %arg8[%207, %c0_54] : memref<8x200xf32, #tpu.memory_space<vmem>>, vector<1x200xf32>
    %cst_55 = arith.constant dense<0.000000e+00> : vector<1x200xf32>
    %209 = tpu.matmul %197, %11, %cst_55 {dimension_numbers = #tpu.dot_dimension_numbers<[1], [0], [0], [1], [0, 0, 1, 1], [], []>} : vector<1x50xf32>, vector<50x200xf32>, vector<1x200xf32> -> vector<1x200xf32>
    %210 = arith.addf %208, %209 : vector<1x200xf32>
    %211 = vector.extract_strided_slice %206 {offsets = [0, 0], sizes = [1, 50], strides = [1, 1]} : vector<1x200xf32> to vector<1x50xf32>
    %212 = arith.negf %211 : vector<1x50xf32>
    %213 = math.exp %212 : vector<1x50xf32>
    %cst_56 = arith.constant 1.000000e+00 : f32
    %214 = vector.broadcast %cst_56 : f32 to vector<1x50xf32>
    %215 = arith.addf %214, %213 : vector<1x50xf32>
    %216 = arith.divf %214, %215 : vector<1x50xf32>
    %217 = vector.extract_strided_slice %206 {offsets = [0, 50], sizes = [1, 50], strides = [1, 1]} : vector<1x200xf32> to vector<1x50xf32>
    %218 = arith.negf %217 : vector<1x50xf32>
    %219 = math.exp %218 : vector<1x50xf32>
    %cst_57 = arith.constant 1.000000e+00 : f32
    %220 = vector.broadcast %cst_57 : f32 to vector<1x50xf32>
    %221 = arith.addf %220, %219 : vector<1x50xf32>
    %222 = arith.divf %220, %221 : vector<1x50xf32>
    %223 = vector.extract_strided_slice %206 {offsets = [0, 100], sizes = [1, 50], strides = [1, 1]} : vector<1x200xf32> to vector<1x50xf32>
    %224 = math.tanh %223 : vector<1x50xf32>
    %225 = vector.extract_strided_slice %206 {offsets = [0, 150], sizes = [1, 50], strides = [1, 1]} : vector<1x200xf32> to vector<1x50xf32>
    %226 = arith.negf %225 : vector<1x50xf32>
    %227 = math.exp %226 : vector<1x50xf32>
    %cst_58 = arith.constant 1.000000e+00 : f32
    %228 = vector.broadcast %cst_58 : f32 to vector<1x50xf32>
    %229 = arith.addf %228, %227 : vector<1x50xf32>
    %230 = arith.divf %228, %229 : vector<1x50xf32>
    %231 = arith.mulf %222, %170 : vector<1x50xf32>
    %232 = arith.mulf %216, %224 : vector<1x50xf32>
    %233 = arith.addf %231, %232 : vector<1x50xf32>
    %234 = math.tanh %233 : vector<1x50xf32>
    %235 = arith.mulf %230, %234 : vector<1x50xf32>
    %236 = vector.extract_strided_slice %210 {offsets = [0, 0], sizes = [1, 50], strides = [1, 1]} : vector<1x200xf32> to vector<1x50xf32>
    %237 = arith.negf %236 : vector<1x50xf32>
    %238 = math.exp %237 : vector<1x50xf32>
    %cst_59 = arith.constant 1.000000e+00 : f32
    %239 = vector.broadcast %cst_59 : f32 to vector<1x50xf32>
    %240 = arith.addf %239, %238 : vector<1x50xf32>
    %241 = arith.divf %239, %240 : vector<1x50xf32>
    %242 = vector.extract_strided_slice %210 {offsets = [0, 50], sizes = [1, 50], strides = [1, 1]} : vector<1x200xf32> to vector<1x50xf32>
    %243 = arith.negf %242 : vector<1x50xf32>
    %244 = math.exp %243 : vector<1x50xf32>
    %cst_60 = arith.constant 1.000000e+00 : f32
    %245 = vector.broadcast %cst_60 : f32 to vector<1x50xf32>
    %246 = arith.addf %245, %244 : vector<1x50xf32>
    %247 = arith.divf %245, %246 : vector<1x50xf32>
    %248 = vector.extract_strided_slice %210 {offsets = [0, 100], sizes = [1, 50], strides = [1, 1]} : vector<1x200xf32> to vector<1x50xf32>
    %249 = math.tanh %248 : vector<1x50xf32>
    %250 = vector.extract_strided_slice %210 {offsets = [0, 150], sizes = [1, 50], strides = [1, 1]} : vector<1x200xf32> to vector<1x50xf32>
    %251 = arith.negf %250 : vector<1x50xf32>
    %252 = math.exp %251 : vector<1x50xf32>
    %cst_61 = arith.constant 1.000000e+00 : f32
    %253 = vector.broadcast %cst_61 : f32 to vector<1x50xf32>
    %254 = arith.addf %253, %252 : vector<1x50xf32>
    %255 = arith.divf %253, %254 : vector<1x50xf32>
    %256 = arith.mulf %247, %195 : vector<1x50xf32>
    %257 = arith.mulf %241, %249 : vector<1x50xf32>
    %258 = arith.addf %256, %257 : vector<1x50xf32>
    %259 = math.tanh %258 : vector<1x50xf32>
    %260 = arith.mulf %255, %259 : vector<1x50xf32>
    %261 = arith.index_cast %c3_i32 : i32 to index
    %c0_62 = arith.constant 0 : index
    %262 = vector.load %arg6[%261, %c0_62] : memref<8x100xf32, #tpu.memory_space<vmem>>, vector<1x50xf32>
    tpu.vector_store %arg6[%261, %c0_62], %235 {strides = array<i32>} : memref<8x100xf32, #tpu.memory_space<vmem>>, vector<1x50xf32>,
    %263 = arith.index_cast %202 : i32 to index
    %c50_63 = arith.constant 50 : index
    %264 = vector.load %arg6[%263, %c50_63] : memref<8x100xf32, #tpu.memory_space<vmem>>, vector<1x50xf32>
    tpu.vector_store %arg6[%263, %c50_63], %260 {strides = array<i32>} : memref<8x100xf32, #tpu.memory_space<vmem>>, vector<1x50xf32>,
    %c4_i32 = arith.constant 4 : i32
    %c7_i32_64 = arith.constant 7 : i32
    %265 = arith.subi %c7_i32_64, %c4_i32 : i32
    %266 = arith.index_cast %c4_i32 : i32 to index
    %c0_65 = arith.constant 0 : index
    %267 = vector.load %arg7[%266, %c0_65] : memref<8x200xf32, #tpu.memory_space<vmem>>, vector<1x200xf32>
    %cst_66 = arith.constant dense<0.000000e+00> : vector<1x200xf32>
    %268 = tpu.matmul %235, %10, %cst_66 {dimension_numbers = #tpu.dot_dimension_numbers<[1], [0], [0], [1], [0, 0, 1, 1], [], []>} : vector<1x50xf32>, vector<50x200xf32>, vector<1x200xf32> -> vector<1x200xf32>
    %269 = arith.addf %267, %268 : vector<1x200xf32>
    %270 = arith.index_cast %265 : i32 to index
    %c0_67 = arith.constant 0 : index
    %271 = vector.load %arg8[%270, %c0_67] : memref<8x200xf32, #tpu.memory_space<vmem>>, vector<1x200xf32>
    %cst_68 = arith.constant dense<0.000000e+00> : vector<1x200xf32>
    %272 = tpu.matmul %260, %11, %cst_68 {dimension_numbers = #tpu.dot_dimension_numbers<[1], [0], [0], [1], [0, 0, 1, 1], [], []>} : vector<1x50xf32>, vector<50x200xf32>, vector<1x200xf32> -> vector<1x200xf32>
    %273 = arith.addf %271, %272 : vector<1x200xf32>
    %274 = vector.extract_strided_slice %269 {offsets = [0, 0], sizes = [1, 50], strides = [1, 1]} : vector<1x200xf32> to vector<1x50xf32>
    %275 = arith.negf %274 : vector<1x50xf32>
    %276 = math.exp %275 : vector<1x50xf32>
    %cst_69 = arith.constant 1.000000e+00 : f32
    %277 = vector.broadcast %cst_69 : f32 to vector<1x50xf32>
    %278 = arith.addf %277, %276 : vector<1x50xf32>
    %279 = arith.divf %277, %278 : vector<1x50xf32>
    %280 = vector.extract_strided_slice %269 {offsets = [0, 50], sizes = [1, 50], strides = [1, 1]} : vector<1x200xf32> to vector<1x50xf32>
    %281 = arith.negf %280 : vector<1x50xf32>
    %282 = math.exp %281 : vector<1x50xf32>
    %cst_70 = arith.constant 1.000000e+00 : f32
    %283 = vector.broadcast %cst_70 : f32 to vector<1x50xf32>
    %284 = arith.addf %283, %282 : vector<1x50xf32>
    %285 = arith.divf %283, %284 : vector<1x50xf32>
    %286 = vector.extract_strided_slice %269 {offsets = [0, 100], sizes = [1, 50], strides = [1, 1]} : vector<1x200xf32> to vector<1x50xf32>
    %287 = math.tanh %286 : vector<1x50xf32>
    %288 = vector.extract_strided_slice %269 {offsets = [0, 150], sizes = [1, 50], strides = [1, 1]} : vector<1x200xf32> to vector<1x50xf32>
    %289 = arith.negf %288 : vector<1x50xf32>
    %290 = math.exp %289 : vector<1x50xf32>
    %cst_71 = arith.constant 1.000000e+00 : f32
    %291 = vector.broadcast %cst_71 : f32 to vector<1x50xf32>
    %292 = arith.addf %291, %290 : vector<1x50xf32>
    %293 = arith.divf %291, %292 : vector<1x50xf32>
    %294 = arith.mulf %285, %233 : vector<1x50xf32>
    %295 = arith.mulf %279, %287 : vector<1x50xf32>
    %296 = arith.addf %294, %295 : vector<1x50xf32>
    %297 = math.tanh %296 : vector<1x50xf32>
    %298 = arith.mulf %293, %297 : vector<1x50xf32>
    %299 = vector.extract_strided_slice %273 {offsets = [0, 0], sizes = [1, 50], strides = [1, 1]} : vector<1x200xf32> to vector<1x50xf32>
    %300 = arith.negf %299 : vector<1x50xf32>
    %301 = math.exp %300 : vector<1x50xf32>
    %cst_72 = arith.constant 1.000000e+00 : f32
    %302 = vector.broadcast %cst_72 : f32 to vector<1x50xf32>
    %303 = arith.addf %302, %301 : vector<1x50xf32>
    %304 = arith.divf %302, %303 : vector<1x50xf32>
    %305 = vector.extract_strided_slice %273 {offsets = [0, 50], sizes = [1, 50], strides = [1, 1]} : vector<1x200xf32> to vector<1x50xf32>
    %306 = arith.negf %305 : vector<1x50xf32>
    %307 = math.exp %306 : vector<1x50xf32>
    %cst_73 = arith.constant 1.000000e+00 : f32
    %308 = vector.broadcast %cst_73 : f32 to vector<1x50xf32>
    %309 = arith.addf %308, %307 : vector<1x50xf32>
    %310 = arith.divf %308, %309 : vector<1x50xf32>
    %311 = vector.extract_strided_slice %273 {offsets = [0, 100], sizes = [1, 50], strides = [1, 1]} : vector<1x200xf32> to vector<1x50xf32>
    %312 = math.tanh %311 : vector<1x50xf32>
    %313 = vector.extract_strided_slice %273 {offsets = [0, 150], sizes = [1, 50], strides = [1, 1]} : vector<1x200xf32> to vector<1x50xf32>
    %314 = arith.negf %313 : vector<1x50xf32>
    %315 = math.exp %314 : vector<1x50xf32>
    %cst_74 = arith.constant 1.000000e+00 : f32
    %316 = vector.broadcast %cst_74 : f32 to vector<1x50xf32>
    %317 = arith.addf %316, %315 : vector<1x50xf32>
    %318 = arith.divf %316, %317 : vector<1x50xf32>
    %319 = arith.mulf %310, %258 : vector<1x50xf32>
    %320 = arith.mulf %304, %312 : vector<1x50xf32>
    %321 = arith.addf %319, %320 : vector<1x50xf32>
    %322 = math.tanh %321 : vector<1x50xf32>
    %323 = arith.mulf %318, %322 : vector<1x50xf32>
    %324 = arith.index_cast %c4_i32 : i32 to index
    %c0_75 = arith.constant 0 : index
    %325 = vector.load %arg6[%324, %c0_75] : memref<8x100xf32, #tpu.memory_space<vmem>>, vector<1x50xf32>
    tpu.vector_store %arg6[%324, %c0_75], %298 {strides = array<i32>} : memref<8x100xf32, #tpu.memory_space<vmem>>, vector<1x50xf32>,
    %326 = arith.index_cast %265 : i32 to index
    %c50_76 = arith.constant 50 : index
    %327 = vector.load %arg6[%326, %c50_76] : memref<8x100xf32, #tpu.memory_space<vmem>>, vector<1x50xf32>
    tpu.vector_store %arg6[%326, %c50_76], %323 {strides = array<i32>} : memref<8x100xf32, #tpu.memory_space<vmem>>, vector<1x50xf32>,
    %c5_i32 = arith.constant 5 : i32
    %c7_i32_77 = arith.constant 7 : i32
    %328 = arith.subi %c7_i32_77, %c5_i32 : i32
    %329 = arith.index_cast %c5_i32 : i32 to index
    %c0_78 = arith.constant 0 : index
    %330 = vector.load %arg7[%329, %c0_78] : memref<8x200xf32, #tpu.memory_space<vmem>>, vector<1x200xf32>
    %cst_79 = arith.constant dense<0.000000e+00> : vector<1x200xf32>
    %331 = tpu.matmul %298, %10, %cst_79 {dimension_numbers = #tpu.dot_dimension_numbers<[1], [0], [0], [1], [0, 0, 1, 1], [], []>} : vector<1x50xf32>, vector<50x200xf32>, vector<1x200xf32> -> vector<1x200xf32>
    %332 = arith.addf %330, %331 : vector<1x200xf32>
    %333 = arith.index_cast %328 : i32 to index
    %c0_80 = arith.constant 0 : index
    %334 = vector.load %arg8[%333, %c0_80] : memref<8x200xf32, #tpu.memory_space<vmem>>, vector<1x200xf32>
    %cst_81 = arith.constant dense<0.000000e+00> : vector<1x200xf32>
    %335 = tpu.matmul %323, %11, %cst_81 {dimension_numbers = #tpu.dot_dimension_numbers<[1], [0], [0], [1], [0, 0, 1, 1], [], []>} : vector<1x50xf32>, vector<50x200xf32>, vector<1x200xf32> -> vector<1x200xf32>
    %336 = arith.addf %334, %335 : vector<1x200xf32>
    %337 = vector.extract_strided_slice %332 {offsets = [0, 0], sizes = [1, 50], strides = [1, 1]} : vector<1x200xf32> to vector<1x50xf32>
    %338 = arith.negf %337 : vector<1x50xf32>
    %339 = math.exp %338 : vector<1x50xf32>
    %cst_82 = arith.constant 1.000000e+00 : f32
    %340 = vector.broadcast %cst_82 : f32 to vector<1x50xf32>
    %341 = arith.addf %340, %339 : vector<1x50xf32>
    %342 = arith.divf %340, %341 : vector<1x50xf32>
    %343 = vector.extract_strided_slice %332 {offsets = [0, 50], sizes = [1, 50], strides = [1, 1]} : vector<1x200xf32> to vector<1x50xf32>
    %344 = arith.negf %343 : vector<1x50xf32>
    %345 = math.exp %344 : vector<1x50xf32>
    %cst_83 = arith.constant 1.000000e+00 : f32
    %346 = vector.broadcast %cst_83 : f32 to vector<1x50xf32>
    %347 = arith.addf %346, %345 : vector<1x50xf32>
    %348 = arith.divf %346, %347 : vector<1x50xf32>
    %349 = vector.extract_strided_slice %332 {offsets = [0, 100], sizes = [1, 50], strides = [1, 1]} : vector<1x200xf32> to vector<1x50xf32>
    %350 = math.tanh %349 : vector<1x50xf32>
    %351 = vector.extract_strided_slice %332 {offsets = [0, 150], sizes = [1, 50], strides = [1, 1]} : vector<1x200xf32> to vector<1x50xf32>
    %352 = arith.negf %351 : vector<1x50xf32>
    %353 = math.exp %352 : vector<1x50xf32>
    %cst_84 = arith.constant 1.000000e+00 : f32
    %354 = vector.broadcast %cst_84 : f32 to vector<1x50xf32>
    %355 = arith.addf %354, %353 : vector<1x50xf32>
    %356 = arith.divf %354, %355 : vector<1x50xf32>
    %357 = arith.mulf %348, %296 : vector<1x50xf32>
    %358 = arith.mulf %342, %350 : vector<1x50xf32>
    %359 = arith.addf %357, %358 : vector<1x50xf32>
    %360 = math.tanh %359 : vector<1x50xf32>
    %361 = arith.mulf %356, %360 : vector<1x50xf32>
    %362 = vector.extract_strided_slice %336 {offsets = [0, 0], sizes = [1, 50], strides = [1, 1]} : vector<1x200xf32> to vector<1x50xf32>
    %363 = arith.negf %362 : vector<1x50xf32>
    %364 = math.exp %363 : vector<1x50xf32>
    %cst_85 = arith.constant 1.000000e+00 : f32
    %365 = vector.broadcast %cst_85 : f32 to vector<1x50xf32>
    %366 = arith.addf %365, %364 : vector<1x50xf32>
    %367 = arith.divf %365, %366 : vector<1x50xf32>
    %368 = vector.extract_strided_slice %336 {offsets = [0, 50], sizes = [1, 50], strides = [1, 1]} : vector<1x200xf32> to vector<1x50xf32>
    %369 = arith.negf %368 : vector<1x50xf32>
    %370 = math.exp %369 : vector<1x50xf32>
    %cst_86 = arith.constant 1.000000e+00 : f32
    %371 = vector.broadcast %cst_86 : f32 to vector<1x50xf32>
    %372 = arith.addf %371, %370 : vector<1x50xf32>
    %373 = arith.divf %371, %372 : vector<1x50xf32>
    %374 = vector.extract_strided_slice %336 {offsets = [0, 100], sizes = [1, 50], strides = [1, 1]} : vector<1x200xf32> to vector<1x50xf32>
    %375 = math.tanh %374 : vector<1x50xf32>
    %376 = vector.extract_strided_slice %336 {offsets = [0, 150], sizes = [1, 50], strides = [1, 1]} : vector<1x200xf32> to vector<1x50xf32>
    %377 = arith.negf %376 : vector<1x50xf32>
    %378 = math.exp %377 : vector<1x50xf32>
    %cst_87 = arith.constant 1.000000e+00 : f32
    %379 = vector.broadcast %cst_87 : f32 to vector<1x50xf32>
    %380 = arith.addf %379, %378 : vector<1x50xf32>
    %381 = arith.divf %379, %380 : vector<1x50xf32>
    %382 = arith.mulf %373, %321 : vector<1x50xf32>
    %383 = arith.mulf %367, %375 : vector<1x50xf32>
    %384 = arith.addf %382, %383 : vector<1x50xf32>
    %385 = math.tanh %384 : vector<1x50xf32>
    %386 = arith.mulf %381, %385 : vector<1x50xf32>
    %387 = arith.index_cast %c5_i32 : i32 to index
    %c0_88 = arith.constant 0 : index
    %388 = vector.load %arg6[%387, %c0_88] : memref<8x100xf32, #tpu.memory_space<vmem>>, vector<1x50xf32>
    tpu.vector_store %arg6[%387, %c0_88], %361 {strides = array<i32>} : memref<8x100xf32, #tpu.memory_space<vmem>>, vector<1x50xf32>,
    %389 = arith.index_cast %328 : i32 to index
    %c50_89 = arith.constant 50 : index
    %390 = vector.load %arg6[%389, %c50_89] : memref<8x100xf32, #tpu.memory_space<vmem>>, vector<1x50xf32>
    tpu.vector_store %arg6[%389, %c50_89], %386 {strides = array<i32>} : memref<8x100xf32, #tpu.memory_space<vmem>>, vector<1x50xf32>,
    %c6_i32 = arith.constant 6 : i32
    %c7_i32_90 = arith.constant 7 : i32
    %391 = arith.subi %c7_i32_90, %c6_i32 : i32
    %392 = arith.index_cast %c6_i32 : i32 to index
    %c0_91 = arith.constant 0 : index
    %393 = vector.load %arg7[%392, %c0_91] : memref<8x200xf32, #tpu.memory_space<vmem>>, vector<1x200xf32>
    %cst_92 = arith.constant dense<0.000000e+00> : vector<1x200xf32>
    %394 = tpu.matmul %361, %10, %cst_92 {dimension_numbers = #tpu.dot_dimension_numbers<[1], [0], [0], [1], [0, 0, 1, 1], [], []>} : vector<1x50xf32>, vector<50x200xf32>, vector<1x200xf32> -> vector<1x200xf32>
    %395 = arith.addf %393, %394 : vector<1x200xf32>
    %396 = arith.index_cast %391 : i32 to index
    %c0_93 = arith.constant 0 : index
    %397 = vector.load %arg8[%396, %c0_93] : memref<8x200xf32, #tpu.memory_space<vmem>>, vector<1x200xf32>
    %cst_94 = arith.constant dense<0.000000e+00> : vector<1x200xf32>
    %398 = tpu.matmul %386, %11, %cst_94 {dimension_numbers = #tpu.dot_dimension_numbers<[1], [0], [0], [1], [0, 0, 1, 1], [], []>} : vector<1x50xf32>, vector<50x200xf32>, vector<1x200xf32> -> vector<1x200xf32>
    %399 = arith.addf %397, %398 : vector<1x200xf32>
    %400 = vector.extract_strided_slice %395 {offsets = [0, 0], sizes = [1, 50], strides = [1, 1]} : vector<1x200xf32> to vector<1x50xf32>
    %401 = arith.negf %400 : vector<1x50xf32>
    %402 = math.exp %401 : vector<1x50xf32>
    %cst_95 = arith.constant 1.000000e+00 : f32
    %403 = vector.broadcast %cst_95 : f32 to vector<1x50xf32>
    %404 = arith.addf %403, %402 : vector<1x50xf32>
    %405 = arith.divf %403, %404 : vector<1x50xf32>
    %406 = vector.extract_strided_slice %395 {offsets = [0, 50], sizes = [1, 50], strides = [1, 1]} : vector<1x200xf32> to vector<1x50xf32>
    %407 = arith.negf %406 : vector<1x50xf32>
    %408 = math.exp %407 : vector<1x50xf32>
    %cst_96 = arith.constant 1.000000e+00 : f32
    %409 = vector.broadcast %cst_96 : f32 to vector<1x50xf32>
    %410 = arith.addf %409, %408 : vector<1x50xf32>
    %411 = arith.divf %409, %410 : vector<1x50xf32>
    %412 = vector.extract_strided_slice %395 {offsets = [0, 100], sizes = [1, 50], strides = [1, 1]} : vector<1x200xf32> to vector<1x50xf32>
    %413 = math.tanh %412 : vector<1x50xf32>
    %414 = vector.extract_strided_slice %395 {offsets = [0, 150], sizes = [1, 50], strides = [1, 1]} : vector<1x200xf32> to vector<1x50xf32>
    %415 = arith.negf %414 : vector<1x50xf32>
    %416 = math.exp %415 : vector<1x50xf32>
    %cst_97 = arith.constant 1.000000e+00 : f32
    %417 = vector.broadcast %cst_97 : f32 to vector<1x50xf32>
    %418 = arith.addf %417, %416 : vector<1x50xf32>
    %419 = arith.divf %417, %418 : vector<1x50xf32>
    %420 = arith.mulf %411, %359 : vector<1x50xf32>
    %421 = arith.mulf %405, %413 : vector<1x50xf32>
    %422 = arith.addf %420, %421 : vector<1x50xf32>
    %423 = math.tanh %422 : vector<1x50xf32>
    %424 = arith.mulf %419, %423 : vector<1x50xf32>
    %425 = vector.extract_strided_slice %399 {offsets = [0, 0], sizes = [1, 50], strides = [1, 1]} : vector<1x200xf32> to vector<1x50xf32>
    %426 = arith.negf %425 : vector<1x50xf32>
    %427 = math.exp %426 : vector<1x50xf32>
    %cst_98 = arith.constant 1.000000e+00 : f32
    %428 = vector.broadcast %cst_98 : f32 to vector<1x50xf32>
    %429 = arith.addf %428, %427 : vector<1x50xf32>
    %430 = arith.divf %428, %429 : vector<1x50xf32>
    %431 = vector.extract_strided_slice %399 {offsets = [0, 50], sizes = [1, 50], strides = [1, 1]} : vector<1x200xf32> to vector<1x50xf32>
    %432 = arith.negf %431 : vector<1x50xf32>
    %433 = math.exp %432 : vector<1x50xf32>
    %cst_99 = arith.constant 1.000000e+00 : f32
    %434 = vector.broadcast %cst_99 : f32 to vector<1x50xf32>
    %435 = arith.addf %434, %433 : vector<1x50xf32>
    %436 = arith.divf %434, %435 : vector<1x50xf32>
    %437 = vector.extract_strided_slice %399 {offsets = [0, 100], sizes = [1, 50], strides = [1, 1]} : vector<1x200xf32> to vector<1x50xf32>
    %438 = math.tanh %437 : vector<1x50xf32>
    %439 = vector.extract_strided_slice %399 {offsets = [0, 150], sizes = [1, 50], strides = [1, 1]} : vector<1x200xf32> to vector<1x50xf32>
    %440 = arith.negf %439 : vector<1x50xf32>
    %441 = math.exp %440 : vector<1x50xf32>
    %cst_100 = arith.constant 1.000000e+00 : f32
    %442 = vector.broadcast %cst_100 : f32 to vector<1x50xf32>
    %443 = arith.addf %442, %441 : vector<1x50xf32>
    %444 = arith.divf %442, %443 : vector<1x50xf32>
    %445 = arith.mulf %436, %384 : vector<1x50xf32>
    %446 = arith.mulf %430, %438 : vector<1x50xf32>
    %447 = arith.addf %445, %446 : vector<1x50xf32>
    %448 = math.tanh %447 : vector<1x50xf32>
    %449 = arith.mulf %444, %448 : vector<1x50xf32>
    %450 = arith.index_cast %c6_i32 : i32 to index
    %c0_101 = arith.constant 0 : index
    %451 = vector.load %arg6[%450, %c0_101] : memref<8x100xf32, #tpu.memory_space<vmem>>, vector<1x50xf32>
    tpu.vector_store %arg6[%450, %c0_101], %424 {strides = array<i32>} : memref<8x100xf32, #tpu.memory_space<vmem>>, vector<1x50xf32>,
    %452 = arith.index_cast %391 : i32 to index
    %c50_102 = arith.constant 50 : index
    %453 = vector.load %arg6[%452, %c50_102] : memref<8x100xf32, #tpu.memory_space<vmem>>, vector<1x50xf32>
    tpu.vector_store %arg6[%452, %c50_102], %449 {strides = array<i32>} : memref<8x100xf32, #tpu.memory_space<vmem>>, vector<1x50xf32>,
    %c7_i32_103 = arith.constant 7 : i32
    %c7_i32_104 = arith.constant 7 : i32
    %454 = arith.subi %c7_i32_104, %c7_i32_103 : i32
    %455 = arith.index_cast %c7_i32_103 : i32 to index
    %c0_105 = arith.constant 0 : index
    %456 = vector.load %arg7[%455, %c0_105] : memref<8x200xf32, #tpu.memory_space<vmem>>, vector<1x200xf32>
    %cst_106 = arith.constant dense<0.000000e+00> : vector<1x200xf32>
    %457 = tpu.matmul %424, %10, %cst_106 {dimension_numbers = #tpu.dot_dimension_numbers<[1], [0], [0], [1], [0, 0, 1, 1], [], []>} : vector<1x50xf32>, vector<50x200xf32>, vector<1x200xf32> -> vector<1x200xf32>
    %458 = arith.addf %456, %457 : vector<1x200xf32>
    %459 = arith.index_cast %454 : i32 to index
    %c0_107 = arith.constant 0 : index
    %460 = vector.load %arg8[%459, %c0_107] : memref<8x200xf32, #tpu.memory_space<vmem>>, vector<1x200xf32>
    %cst_108 = arith.constant dense<0.000000e+00> : vector<1x200xf32>
    %461 = tpu.matmul %449, %11, %cst_108 {dimension_numbers = #tpu.dot_dimension_numbers<[1], [0], [0], [1], [0, 0, 1, 1], [], []>} : vector<1x50xf32>, vector<50x200xf32>, vector<1x200xf32> -> vector<1x200xf32>
    %462 = arith.addf %460, %461 : vector<1x200xf32>
    %463 = vector.extract_strided_slice %458 {offsets = [0, 0], sizes = [1, 50], strides = [1, 1]} : vector<1x200xf32> to vector<1x50xf32>
    %464 = arith.negf %463 : vector<1x50xf32>
    %465 = math.exp %464 : vector<1x50xf32>
    %cst_109 = arith.constant 1.000000e+00 : f32
    %466 = vector.broadcast %cst_109 : f32 to vector<1x50xf32>
    %467 = arith.addf %466, %465 : vector<1x50xf32>
    %468 = arith.divf %466, %467 : vector<1x50xf32>
    %469 = vector.extract_strided_slice %458 {offsets = [0, 50], sizes = [1, 50], strides = [1, 1]} : vector<1x200xf32> to vector<1x50xf32>
    %470 = arith.negf %469 : vector<1x50xf32>
    %471 = math.exp %470 : vector<1x50xf32>
    %cst_110 = arith.constant 1.000000e+00 : f32
    %472 = vector.broadcast %cst_110 : f32 to vector<1x50xf32>
    %473 = arith.addf %472, %471 : vector<1x50xf32>
    %474 = arith.divf %472, %473 : vector<1x50xf32>
    %475 = vector.extract_strided_slice %458 {offsets = [0, 100], sizes = [1, 50], strides = [1, 1]} : vector<1x200xf32> to vector<1x50xf32>
    %476 = math.tanh %475 : vector<1x50xf32>
    %477 = vector.extract_strided_slice %458 {offsets = [0, 150], sizes = [1, 50], strides = [1, 1]} : vector<1x200xf32> to vector<1x50xf32>
    %478 = arith.negf %477 : vector<1x50xf32>
    %479 = math.exp %478 : vector<1x50xf32>
    %cst_111 = arith.constant 1.000000e+00 : f32
    %480 = vector.broadcast %cst_111 : f32 to vector<1x50xf32>
    %481 = arith.addf %480, %479 : vector<1x50xf32>
    %482 = arith.divf %480, %481 : vector<1x50xf32>
    %483 = arith.mulf %474, %422 : vector<1x50xf32>
    %484 = arith.mulf %468, %476 : vector<1x50xf32>
    %485 = arith.addf %483, %484 : vector<1x50xf32>
    %486 = math.tanh %485 : vector<1x50xf32>
    %487 = arith.mulf %482, %486 : vector<1x50xf32>
    %488 = vector.extract_strided_slice %462 {offsets = [0, 0], sizes = [1, 50], strides = [1, 1]} : vector<1x200xf32> to vector<1x50xf32>
    %489 = arith.negf %488 : vector<1x50xf32>
    %490 = math.exp %489 : vector<1x50xf32>
    %cst_112 = arith.constant 1.000000e+00 : f32
    %491 = vector.broadcast %cst_112 : f32 to vector<1x50xf32>
    %492 = arith.addf %491, %490 : vector<1x50xf32>
    %493 = arith.divf %491, %492 : vector<1x50xf32>
    %494 = vector.extract_strided_slice %462 {offsets = [0, 50], sizes = [1, 50], strides = [1, 1]} : vector<1x200xf32> to vector<1x50xf32>
    %495 = arith.negf %494 : vector<1x50xf32>
    %496 = math.exp %495 : vector<1x50xf32>
    %cst_113 = arith.constant 1.000000e+00 : f32
    %497 = vector.broadcast %cst_113 : f32 to vector<1x50xf32>
    %498 = arith.addf %497, %496 : vector<1x50xf32>
    %499 = arith.divf %497, %498 : vector<1x50xf32>
    %500 = vector.extract_strided_slice %462 {offsets = [0, 100], sizes = [1, 50], strides = [1, 1]} : vector<1x200xf32> to vector<1x50xf32>
    %501 = math.tanh %500 : vector<1x50xf32>
    %502 = vector.extract_strided_slice %462 {offsets = [0, 150], sizes = [1, 50], strides = [1, 1]} : vector<1x200xf32> to vector<1x50xf32>
    %503 = arith.negf %502 : vector<1x50xf32>
    %504 = math.exp %503 : vector<1x50xf32>
    %cst_114 = arith.constant 1.000000e+00 : f32
    %505 = vector.broadcast %cst_114 : f32 to vector<1x50xf32>
    %506 = arith.addf %505, %504 : vector<1x50xf32>
    %507 = arith.divf %505, %506 : vector<1x50xf32>
    %508 = arith.mulf %499, %447 : vector<1x50xf32>
    %509 = arith.mulf %493, %501 : vector<1x50xf32>
    %510 = arith.addf %508, %509 : vector<1x50xf32>
    %511 = math.tanh %510 : vector<1x50xf32>
    %512 = arith.mulf %507, %511 : vector<1x50xf32>
    %513 = arith.index_cast %c7_i32_103 : i32 to index
    %c0_115 = arith.constant 0 : index
    %514 = vector.load %arg6[%513, %c0_115] : memref<8x100xf32, #tpu.memory_space<vmem>>, vector<1x50xf32>
    tpu.vector_store %arg6[%513, %c0_115], %487 {strides = array<i32>} : memref<8x100xf32, #tpu.memory_space<vmem>>, vector<1x50xf32>,
    %515 = arith.index_cast %454 : i32 to index
    %c50_116 = arith.constant 50 : index
    %516 = vector.load %arg6[%515, %c50_116] : memref<8x100xf32, #tpu.memory_space<vmem>>, vector<1x50xf32>
    tpu.vector_store %arg6[%515, %c50_116], %512 {strides = array<i32>} : memref<8x100xf32, #tpu.memory_space<vmem>>, vector<1x50xf32>,
    %c8_i32 = arith.constant 8 : i32
    return
  }
  func.func @transform_0(%arg0: i32) -> (i32, i32) {
    %c0_i32 = arith.constant 0 : i32
    %c0_i32_0 = arith.constant 0 : i32
    %c0_i32_1 = arith.constant 0 : i32
    return %c0_i32, %c0_i32_0 : i32, i32
  }
  func.func @transform_1(%arg0: i32) -> (i32, i32) {
    %c0_i32 = arith.constant 0 : i32
    %c0_i32_0 = arith.constant 0 : i32
    %c0_i32_1 = arith.constant 0 : i32
    return %c0_i32, %c0_i32_0 : i32, i32
  }
  func.func @transform_2(%arg0: i32) -> (i32, i32) {
    %c0_i32 = arith.constant 0 : i32
    %c0_i32_0 = arith.constant 0 : i32
    %c0_i32_1 = arith.constant 0 : i32
    return %c0_i32, %c0_i32_0 : i32, i32
  }
  func.func @transform_3(%arg0: i32) -> (i32, i32) {
    %c0_i32 = arith.constant 0 : i32
    %c0_i32_0 = arith.constant 0 : i32
    %c0_i32_1 = arith.constant 0 : i32
    return %c0_i32, %c0_i32_0 : i32, i32
  }
  func.func @transform_4(%arg0: i32) -> (i32, i32) {
    %c0_i32 = arith.constant 0 : i32
    %c0_i32_0 = arith.constant 0 : i32
    %c0_i32_1 = arith.constant 0 : i32
    return %c0_i32, %c0_i32_0 : i32, i32
  }
  func.func @transform_5(%arg0: i32) -> (i32, i32) {
    %c0_i32 = arith.constant 0 : i32
    %c0_i32_0 = arith.constant 0 : i32
    %c0_i32_1 = arith.constant 0 : i32
    return %c0_i32, %c0_i32_0 : i32, i32
  }
}

</mosaic_0001>

<bundles_post_ra>
// kernel: tpu_custom_call.1
= control target key start
LH: loop header
LB: loop body
LE: loop exit
PB: predicated region body
PF: predicated region fallthrough
CT: control target
= control target key end

     0   :  { %10 = vsyncpa [#allocation5], 0  ;;  %s3686_s0 = inlined_call_operand.hbm [shape: f32[8,50], index: 0, kind: input, shape index: {}]   ;;  %s3687_s1 = inlined_call_operand.hbm [shape: f32[50,400], index: 1, kind: input, shape index: {}]   ;;  %s3688_s2 = inlined_call_operand.hbm [shape: f32[50,200], index: 2, kind: input, shape index: {}]   ;;  %s3689_s3 = inlined_call_operand.hbm [shape: f32[50,200], index: 3, kind: input, shape index: {}]   ;;  %s3690_s4 = inlined_call_operand.vmem [shape: f32[1,400], index: 4, kind: input, shape index: {}]   ;;  %s3691_s5 = inlined_call_operand.hbm [shape: f32[8,100], index: 5, kind: output, shape index: {}]  }
   0x1   :  { %11 = vsyncpa [#allocation8], 0 }
   0x2   :  { %12 = vsyncpa [#allocation11], 0 }
   0x3   :  { %13 = vsyncpa [#allocation6], 0  ;;  %s2971_s18 = smov [#allocation7]  }
   0x4   :  { %s29_s19 = sshll.u32 %s2971_s18, 4  ;;  %s30_s19 = int_to_ptr.vmem [resolvable:$true] %s29_s19 }
   0x5   :  { %s2871_s20 = scalar_lea.vmem %s30_s19, 3584  ;;  %p2876_p1 = scmp.lt.s32.totalorder %s30_s19, %s30_s19 }
   0x6   :  { %p2872_p0 = scmp.ne.s32.totalorder %s30_s19, %s2871_s20  ;;  %p2877_p2 = scmp.lt.s32.totalorder %s2871_s20, %s2871_s20 }
   0x8   :  { %p2878_p3 = por %p2877_p2, %p2876_p1 }
   0xa   :  { %p2879_p4 = pnand %p2878_p3, %p2872_p0 }
   0xc   :  { %2882 = shalt.err (!%p2879_p4)
}
   0xd   :  { %s2972_s21 = smov 512   ;;  %s2973_s22 = smov 32  }
   0xe   :  { %35 = dma.hbm_to_vmem [thread:$0]  %s3687_s1, 3584, %s30_s19, [#allocation8], %s2972_s21, %s2972_s21, %s2973_s22  }
   0xf   :  { %s2974_s25 = smov [#allocation4]   ;;  %s2975_s27 = smov [#allocation9]  }
  0x10   :  { %s20_s26 = sshll.u32 %s2974_s25, 4  ;;  %s41_s28 = sshll.u32 %s2975_s27, 4  ;;  %s21_s26 = int_to_ptr.vmem [resolvable:$true] %s20_s26  ;;  %s42_s28 = int_to_ptr.vmem [resolvable:$true] %s41_s28 }
  0x11   :  { %s2891_s29 = scalar_lea.vmem %s21_s26, 128  ;;  %p2896_p6 = scmp.lt.s32.totalorder %s21_s26, %s21_s26 }
  0x12   :  { %p2892_p5 = scmp.ne.s32.totalorder %s21_s26, %s2891_s29  ;;  %p2897_p7 = scmp.lt.s32.totalorder %s2891_s29, %s2891_s29 }
  0x14   :  { %p2898_p8 = por %p2897_p7, %p2896_p6 }
  0x16   :  { %p2899_p9 = pnand %p2898_p8, %p2892_p5 }
  0x18   :  { %2902 = shalt.err (!%p2899_p9)
}
  0x19   :  { %23 = dma.hbm_to_vmem [thread:$0]  %s3686_s0, 128, %s21_s26, [#allocation5]  }
  0x1a   :  { %s2911_s7 = scalar_lea.vmem %s42_s28, 1792  ;;  %p2916_p11 = scmp.lt.s32.totalorder %s42_s28, %s42_s28 }
  0x1b   :  { %p2912_p10 = scmp.ne.s32.totalorder %s42_s28, %s2911_s7  ;;  %p2917_p12 = scmp.lt.s32.totalorder %s2911_s7, %s2911_s7 }
  0x1d   :  { %p2918_p13 = por %p2917_p12, %p2916_p11 }
  0x1f   :  { %p2919_p0 = pnand %p2918_p13, %p2912_p10 }
  0x21   :  { %2922 = shalt.err (!%p2919_p0)
}
  0x22   :  { %s2976_s1 = smov 256   ;;  %s2977_s8 = smov 16  }
  0x23   :  { %47 = dma.hbm_to_vmem [thread:$0]  %s3688_s2, 1792, %s42_s28, [#allocation8], %s2976_s1, %s2976_s1, %s2977_s8  }
  0x24   :  { %s2978_s11 = smov [#allocation10]  }
  0x25   :  { %s53_s12 = sshll.u32 %s2978_s11, 4  ;;  %s54_s12 = int_to_ptr.vmem [resolvable:$true] %s53_s12 }
  0x26   :  { %s2931_s13 = scalar_lea.vmem %s54_s12, 1792  ;;  %p2936_p2 = scmp.lt.s32.totalorder %s54_s12, %s54_s12 }
  0x27   :  { %p2932_p1 = scmp.ne.s32.totalorder %s54_s12, %s2931_s13  ;;  %p2937_p3 = scmp.lt.s32.totalorder %s2931_s13, %s2931_s13 }
  0x29   :  { %p2938_p4 = por %p2937_p3, %p2936_p2 }
  0x2b   :  { %p2939_p5 = pnand %p2938_p4, %p2932_p1 }
  0x2d   :  { %2942 = shalt.err (!%p2939_p5)
}
  0x2e   :  { %59 = dma.hbm_to_vmem [thread:$0]  %s3689_s3, 1792, %s54_s12, [#allocation11], %s2976_s1, %s2976_s1, %s2977_s8  }
  0x2f   :  { %2963 = dma.done.wait [#allocation5], 128  }
  0x30   :  { %2964 = vsyncadd [#allocation5], 4294967168 }
  0x31   :  { %2965 = dma.done.wait [#allocation8], 5376  }
  0x32   :  { %2966 = vsyncadd [#allocation8], 4294961920 }
  0x33   :  { %2967 = dma.done.wait [#allocation11], 1792  }
  0x34   :  { %2968 = vsyncadd [#allocation11], 4294965504  ;;  %v2979_v0 = vmov 0.0   ;;  %vm129_vm0 = vcmask 1041408   ;;  %v100_v1 = vld [vmem:[#allocation7 + $0xc8] sm:$0x3]  ;;  %v105_v58 = vlaneseq }
  0x35   :  { %206 = vmatprep.mubr.f32.mxu0 %v2979_v0  ;;  %277 = vmatprep.mubr.f32.mxu1 %v2979_v0  ;;  %v99_v2 = vld [vmem:[#allocation7 + $0xc0] sm:$0x3]  ;;  %v96_v3 = vld [vmem:[#allocation7 + $0xa8] sm:$0xff]  ;;  %v102_v4 = vld [vmem:[#allocation7 + $0xd8] sm:$0x3]  ;;  %vm125_vm1 = vcmask 408576  }
  0x36   :  { %2543 = vmatprep.subr.msk.mxu0 %vm129_vm0, %v100_v1  ;;  %v95_v5 = vld [vmem:[#allocation7 + $0xa0] sm:$0xff]  ;;  %v101_v6 = vld [vmem:[#allocation7 + $0xd0] sm:$0x3]  ;;  %2546 = vmatprep.subr.msk.mxu1 %vm129_vm0, %v102_v4  ;;  %v92_v7 = vld [vmem:[#allocation7 + $0x88] sm:$0xff]  ;;  %v106_v59 = vshrl.u32 %v105_v58, 7  ;;  %vm285_vm2 = vcmask 588800  }
  0x37   :  { %2544 = vmatpush1.msk.msra.mxu0 %vm129_vm0, %v99_v2  ;;  %v98_v8 = vld [vmem:[#allocation7 + $0xb8] sm:$0xff]  ;;  %2547 = vmatpush1.msk.msra.mxu1 %vm129_vm0, %v101_v6  ;;  %v91_v9 = vld [vmem:[#allocation7 + $0x80] sm:$0xff]  ;;  %v97_v10 = vld [vmem:[#allocation7 + $0xb0] sm:$0xff]  ;;  %s2982_s15 = smov 28   ;;  %vm296_vm3 = vcmask 457728   ;;  %s2983_s16 = smov 106  }
  0x38   :  { %162 = vmatprep.subr.mxu0 %v96_v3  ;;  %v94_v11 = vld [vmem:[#allocation7 + $0x98] sm:$0xff]  ;;  %233 = vmatprep.subr.mxu1 %v98_v8  ;;  %v88_v12 = vld [vmem:[#allocation7 + $0x68] sm:$0xff]  ;;  %v93_v13 = vld [vmem:[#allocation7 + $0x90] sm:$0xff]  ;;  %v3167_v60 = vsub.s32 0, %v106_v59  ;;  %v111_v62 = vsub.s32 1, %v106_v59  ;;  %v119_v1 = vsub.s32 3, %v106_v59 }
  0x39   :  { %163 = vmatpush1.msra.mxu0 %v95_v5  ;;  %234 = vmatpush1.msra.mxu1 %v97_v10  ;;  %v87_v14 = vld [vmem:[#allocation7 + $0x60] sm:$0xff]  ;;  %v90_v15 = vld [vmem:[#allocation7 + $0x78] sm:$0xff]  ;;  %v84_v16 = vld [vmem:[#allocation7 + $0x48] sm:$0xff]  ;;  %v115_v3 = vsub.s32 2, %v106_v59  ;;  %vm552_vm4 = vcmask 228352   ;;  %s2984_s17 = smov 50  }
  0x3a   :  { %164 = vmatprep.subr.mxu0 %v92_v7  ;;  %235 = vmatprep.subr.mxu1 %v94_v11  ;;  %v89_v17 = vld [vmem:[#allocation7 + $0x70] sm:$0xff]  ;;  %v83_v18 = vld [vmem:[#allocation7 + $0x40] sm:$0xff]  ;;  %v86_v19 = vld [vmem:[#allocation7 + $0x58] sm:$0xff]  ;;  %s2985_s18 = smov 78   ;;  %vm604_vm5 = vcmask 401408   ;;  %vm614_vm6 = vcmask 811408  }
  0x3b   :  { %165 = vmatpush1.msra.mxu0 %v91_v9  ;;  %236 = vmatpush1.msra.mxu1 %v93_v13  ;;  %v80_v20 = vld [vmem:[#allocation7 + $0x28] sm:$0xff]  ;;  %v85_v21 = vld [vmem:[#allocation7 + $0x50] sm:$0xff]  ;;  %v79_v22 = vld [vmem:[#allocation7 + $0x20] sm:$0xff]  ;;  %v2981_v13 = vmov 1966171168   ;;  %s2986_s19 = smov [#allocation12]  }
  0x3c   :  { %166 = vmatprep.subr.mxu0 %v88_v12  ;;  %237 = vmatprep.subr.mxu1 %v90_v15  ;;  %v82_v23 = vld [vmem:[#allocation7 + $0x38] sm:$0xff]  ;;  %v76_v24 = vld [vmem:[#allocation7 + $0x8] sm:$0xff]  ;;  %v81_v25 = vld [vmem:[#allocation7 + $0x30] sm:$0xff]  ;;  %s2532_s20 = sshll.u32 %s2986_s19, 4  ;;  %s2533_s20 = int_to_ptr.vmem [resolvable:$true] %s2532_s20 }
  0x3d   :  { %167 = vmatpush1.msra.mxu0 %v87_v14  ;;  %238 = vmatpush1.msra.mxu1 %v89_v17  ;;  %v75_v26 = vld [vmem:[#allocation7] sm:$0xff]  ;;  %v78_v27 = vld [vmem:[#allocation7 + $0x18] sm:$0xff]  ;;  %v3035_v29 = vld [vmem:[#allocation9 + $0x68] sm:$0x3]  ;;  %v416_v14 = vunpack.c.l.s4 %v2981_v13  ;;  %s2943_s21 = scalar_lea.vmem %s2533_s20, 128  ;;  %p2948_p7 = scmp.lt.s32.totalorder %s2533_s20, %s2533_s20 }
  0x3e   :  { %168 = vmatprep.subr.mxu0 %v84_v16  ;;  %239 = vmatprep.subr.mxu1 %v86_v19  ;;  %v74_v28 = vld [vmem:[#allocation4] sm:$0xff]  ;;  %v77_v30 = vld [vmem:[#allocation7 + $0x10] sm:$0xff]  ;;  %v3037_v31 = vld [vmem:[#allocation9 + $0x60] sm:$0x3]  ;;  %p2944_p6 = scmp.ne.s32.totalorder %s2533_s20, %s2943_s21  ;;  %p2949_p8 = scmp.lt.s32.totalorder %s2943_s21, %s2943_s21 }
  0x3f   :  { %169 = vmatpush1.msra.mxu0 %v83_v18  ;;  %240 = vmatpush1.msra.mxu1 %v85_v21  ;;  %v3039_v32 = vld [vmem:[#allocation9 + $0x58] sm:$0xff]  ;;  %v3044_v33 = vld [vmem:[#allocation9 + $0x50] sm:$0xff]  ;;  %v3048_v34 = vld [vmem:[#allocation9 + $0x48] sm:$0xff]  ;;  %v417_v16 = vunpack.c.0.s8 %v416_v14 }
  0x40   :  { %170 = vmatprep.subr.mxu0 %v80_v20  ;;  %241 = vmatprep.subr.mxu1 %v82_v23  ;;  %v3050_v35 = vld [vmem:[#allocation10 + $0x68] sm:$0x3]  ;;  %v3054_v36 = vld [vmem:[#allocation9 + $0x40] sm:$0xff]  ;;  %v3056_v37 = vld [vmem:[#allocation10 + $0x60] sm:$0x3]  ;;  %p2950_p9 = por %p2949_p8, %p2948_p7 }
  0x41   :  { %171 = vmatpush1.msra.mxu0 %v79_v22  ;;  %242 = vmatpush1.msra.mxu1 %v81_v25  ;;  %v3059_v38 = vld [vmem:[#allocation9 + $0x38] sm:$0xff]  ;;  %v3062_v39 = vld [vmem:[#allocation10 + $0x58] sm:$0xff]  ;;  %v3065_v40 = vld [vmem:[#allocation9 + $0x30] sm:$0xff]  ;;  %v3174_v18 = vsub.s32 %v417_v16, %v106_v59 }
  0x42   :  { %172 = vmatprep.subr.mxu0 %v76_v24  ;;  %243 = vmatprep.subr.mxu1 %v78_v27  ;;  %v3069_v41 = vld [vmem:[#allocation10 + $0x50] sm:$0xff]  ;;  %v3072_v42 = vld [vmem:[#allocation9 + $0x28] sm:$0xff]  ;;  %v3076_v43 = vld [vmem:[#allocation10 + $0x48] sm:$0xff]  ;;  %p2951_p10 = pnand %p2950_p9, %p2944_p6 }
  0x43   :  { %173 = vmatpush1.msra.mxu0 %v75_v26  ;;  %244 = vmatpush1.msra.mxu1 %v77_v30  ;;  %v3079_v44 = vld [vmem:[#allocation9 + $0x20] sm:$0xff]  ;;  %v3082_v45 = vld [vmem:[#allocation10 + $0x40] sm:$0xff]  ;;  %v3085_v46 = vld [vmem:[#allocation9 + $0x18] sm:$0xff] }
  0x44   :  { %2545 = vmatmul.mubr.msk.f32.vlgmr.msra.gmra.mxu0 %vm125_vm1, %v74_v28  ;;  %2549 = vmatprep.subr.msk.mxu0 %vm129_vm0, %v3035_v29  ;;  %v3088_v47 = vld [vmem:[#allocation10 + $0x38] sm:$0xff]  ;;  %v3091_v48 = vld [vmem:[#allocation9 + $0x10] sm:$0xff]  ;;  %v3094_v49 = vld [vmem:[#allocation10 + $0x30] sm:$0xff] }
  0x45   :  { %2550 = vmatpush1.msk.msra.mxu0 %vm129_vm0, %v3037_v31  ;;  %2548 = vmatmul.mubr.msk.f32.vlgmr.msra.gmra.mxu1 %vm125_vm1, %v74_v28  ;;  %v3097_v50 = vld [vmem:[#allocation9 + $0x8] sm:$0xff]  ;;  %v3100_v51 = vld [vmem:[#allocation10 + $0x28] sm:$0xff]  ;;  %v3103_v52 = vld [vmem:[#allocation9] sm:$0xff] }
  0x46   :  { %361 = vmatprep.subr.mxu0 %v3039_v32  ;;  %405 = vmatprep.mubr.f32.mxu0 %v2979_v0  ;;  %v3106_v53 = vld [vmem:[#allocation10 + $0x20] sm:$0xff]  ;;  %v3110_v54 = vld [vmem:[#allocation10 + $0x18] sm:$0xff]  ;;  %v3114_v55 = vld [vmem:[#allocation10 + $0x10] sm:$0xff] }
  0x47   :  { %362 = vmatpush1.msra.mxu0 %v3044_v33  ;;  %2551 = vmatprep.subr.msk.mxu1 %vm129_vm0, %v3050_v35  ;;  %v3118_v56 = vld [vmem:[#allocation10 + $0x8] sm:$0xff]  ;;  %v3122_v57 = vld [vmem:[#allocation10] sm:$0xff] }
  0x48   :  { %363 = vmatprep.subr.mxu0 %v3048_v34  ;;  %2552 = vmatpush1.msk.msra.mxu1 %vm129_vm0, %v3056_v37  ;;  %v103_v61 = vld [vmem:[%s3690_s4] sm:$0xf]  ;;  %s2980_s4 = smov 56  }
  0x49   :  { %364 = vmatpush1.msra.mxu0 %v3054_v36  ;;  %459 = vmatprep.subr.mxu1 %v3062_v39  ;;  %v108_v63 = vrot.slane %v103_v61, %v3167_v60  ;;  %v112_v2 = vrot.slane %v103_v61, %v111_v62  ;;  %v120_v6 = vrot.slane %v103_v61, %v119_v1 }
  0x4a   :  { %365 = vmatprep.subr.mxu0 %v3059_v38  ;;  %460 = vmatpush1.msra.mxu1 %v3069_v41  ;;  %v116_v10 = vrot.slane %v103_v61, %v115_v3 }
  0x4b   :  { %366 = vmatpush1.msra.mxu0 %v3065_v40  ;;  %461 = vmatprep.subr.mxu1 %v3076_v43 }
  0x4c   :  { %367 = vmatprep.subr.mxu0 %v3072_v42  ;;  %462 = vmatpush1.msra.mxu1 %v3082_v45 }
  0x4d   :  { %368 = vmatpush1.msra.mxu0 %v3079_v44  ;;  %463 = vmatprep.subr.mxu1 %v3088_v47 }
  0x4e   :  { %369 = vmatprep.subr.mxu0 %v3085_v46  ;;  %464 = vmatpush1.msra.mxu1 %v3094_v49 }
  0x4f   :  { %370 = vmatpush1.msra.mxu0 %v3091_v48  ;;  %465 = vmatprep.subr.mxu1 %v3100_v51 }
  0x50   :  { %371 = vmatprep.subr.mxu0 %v3097_v50  ;;  %466 = vmatpush1.msra.mxu1 %v3106_v53 }
  0x51   :  { %372 = vmatpush1.msra.mxu0 %v3103_v52  ;;  %467 = vmatprep.subr.mxu1 %v3110_v54 }
  0x52   :  { %406 = vmatmul.mubr.f32.vlgmr.msra.gmra.mxu0 %v2979_v0  ;;  %468 = vmatpush1.msra.mxu1 %v3114_v55 }
  0x53   :  { %503 = vmatprep.mubr.f32.mxu1 %v2979_v0  ;;  %469 = vmatprep.subr.mxu1 %v3118_v56 }
  0x54   :  { %2557 = vmatprep.subr.msk.mxu0 %vm129_vm0, %v3035_v29  ;;  %470 = vmatpush1.msra.mxu1 %v3122_v57 }
  0x55   :  { %2558 = vmatpush1.msk.msra.mxu0 %vm129_vm0, %v3037_v31  ;;  %504 = vmatmul.mubr.f32.vlgmr.msra.gmra.mxu1 %v2979_v0 }
  0x56   :  { %2560 = vmatprep.subr.msk.mxu1 %vm129_vm0, %v3050_v35  ;;  %641 = vmatprep.subr.mxu0 %v3039_v32 }
  0x57   :  { %2561 = vmatpush1.msk.msra.mxu1 %vm129_vm0, %v3056_v37  ;;  %642 = vmatpush1.msra.mxu0 %v3044_v33 }
  0x58   :  { %735 = vmatprep.subr.mxu1 %v3062_v39  ;;  %643 = vmatprep.subr.mxu0 %v3048_v34 }
  0x59   :  { %736 = vmatpush1.msra.mxu1 %v3069_v41  ;;  %644 = vmatpush1.msra.mxu0 %v3054_v36 }
  0x5a   :  { %737 = vmatprep.subr.mxu1 %v3076_v43  ;;  %645 = vmatprep.subr.mxu0 %v3059_v38 }
  0x5b   :  { %738 = vmatpush1.msra.mxu1 %v3082_v45  ;;  %646 = vmatpush1.msra.mxu0 %v3065_v40 }
  0x5c   :  { %739 = vmatprep.subr.mxu1 %v3088_v47  ;;  %647 = vmatprep.subr.mxu0 %v3072_v42 }
  0x5d   :  { %740 = vmatpush1.msra.mxu1 %v3094_v49  ;;  %648 = vmatpush1.msra.mxu0 %v3079_v44 }
  0x5e   :  { %741 = vmatprep.subr.mxu1 %v3100_v51  ;;  %779 = vmatprep.mubr.f32.mxu1 %v2979_v0 }
  0x5f   :  { %742 = vmatpush1.msra.mxu1 %v3106_v53  ;;  %649 = vmatprep.subr.mxu0 %v3085_v46 }
  0x60   :  { %743 = vmatprep.subr.mxu1 %v3110_v54  ;;  %650 = vmatpush1.msra.mxu0 %v3091_v48 }
  0x61   :  { %744 = vmatpush1.msra.mxu1 %v3114_v55  ;;  %651 = vmatprep.subr.mxu0 %v3097_v50 }
  0x62   :  { %745 = vmatprep.subr.mxu1 %v3118_v56  ;;  %652 = vmatpush1.msra.mxu0 %v3103_v52 }
  0x63   :  { %746 = vmatpush1.msra.mxu1 %v3122_v57  ;;  %685 = vmatprep.mubr.f32.mxu0 %v2979_v0 }
  0x64   :  { %2570 = vmatprep.subr.msk.mxu1 %vm129_vm0, %v3050_v35  ;;  %2567 = vmatprep.subr.msk.mxu0 %vm129_vm0, %v3035_v29 }
 0x104   :  { %v208_v4 = vpop.f32.mrf.mxu0 }
 0x105   :  { %v209_v5 = vadd.f32 %v208_v4, %v108_v63  ;;  %v279_v8 = vpop.f32.mrf.mxu1 }
 0x106   :  { %v210_v7 = vpop.f32.mrf.mxu0  ;;  %v280_v15 = vadd.f32 %v279_v8, %v116_v10 }
 0x107   :  { %284 = vst [vmem:[#allocation2] sm:$0xff] %v209_v5  ;;  %v211_v9 = vadd.f32 %v210_v7, %v112_v2  ;;  %v281_v11 = vpop.f32.mrf.mxu1 }
 0x108   :  { %v282_v12 = vadd.f32 %v281_v11, %v120_v6 }
 0x109   :  { %286 = vst.msk [vmem:[#allocation2 + $0x8] sm:$0xff] %vm285_vm2, %v211_v9  ;;  %290 = vrot.lane.b32.xlu0 %v211_v9, %s2980_s4 }
 0x10a   :  { %294 = vrot.lane.b32.xlu1 %v282_v12, %s2980_s4 }
 0x10d   :  { %292 = vrot.lane.b32.xlu0 %v280_v15, %s2980_s4 }
 0x110   :  { %v331_v23 = vld [vmem:[#allocation2] ss:$8 sm:$0x3] }
 0x112   :  { %v407_v17 = vpop.f32.mrf.mxu0 }
 0x114   :  { %v409_v19 = vpop.f32.mrf.mxu0 }
 0x115   :  { %v414_v20 = vcombine.low %v407_v17, %v409_v19  ;;  %v505_v26 = vpop.f32.mrf.mxu1 }
 0x117   :  { %v421_v21 = vrot.slane %v414_v20, %v3174_v18  ;;  %v507_v28 = vpop.f32.mrf.mxu1 }
 0x118   :  { %v512_v59 = vcombine.low %v505_v26, %v507_v28 }
 0x119   :  { %v428_v22 = vrot.slane %v421_v21, %v3174_v18 }
 0x11a   :  { %v519_v63 = vrot.slane %v512_v59, %v3174_v18 }
 0x11b   :  { %v430_v24 = vadd.f32 %v428_v22, %v331_v23 }
 0x11c   :  { %v526_v1 = vrot.slane %v519_v63, %v3174_v18 }
 0x11d   :  { %2643 = vtanh.f32 %v430_v24  ;;  %v2553_v6 = vmul.f32 -1.442695, %v430_v24 }
 0x12a   :  { %v2644_v25 = vpop.eup %2643 }
 0x12b   :  { %549 = vrot.lane.b32.xlu0 %v2644_v25, %s2982_s15 }
 0x17b   :  { %v291_v27 = vpop.permute.xlu0 %290 }
 0x17c   :  { %v295_v30 = vpop.permute.xlu1 %294 }
 0x17f   :  { %v293_v58 = vpop.permute.xlu0 %292 }
 0x180   :  { %v297_v61 = vsel %vm296_vm3, %v291_v27, %v293_v58  ;;  %v298_v62 = vsel %vm296_vm3, %v293_v58, %v295_v30 }
 0x181   :  { %301 = vst [vmem:[#allocation3] sm:$0xff] %v297_v61  ;;  %302 = vst.msk [vmem:[#allocation3 + $0x8] sm:$0xff] %vm285_vm2, %v298_v62 }
 0x188   :  { %v432_v2 = vld [vmem:[#allocation3 + $0x7] ss:$8 sm:$0x3] }
 0x189   :  { %v528_v3 = vadd.f32 %v526_v1, %v432_v2 }
 0x18b   :  { %2645 = vtanh.f32 %v528_v3  ;;  %575 = vrot.lane.b32.xlu0 %v528_v3, %s2983_s16  ;;  %v2555_v5 = vmul.f32 -1.442695, %v528_v3 }
 0x18d   :  { %2647 = vpow2.f32 %v2555_v5 }
 0x18e   :  { %2649 = vpow2.f32 %v2553_v6 }
 0x198   :  { %v2646_v4 = vpop.eup %2645 }
 0x199   :  { %587 = vrot.lane.b32.xlu1 %v2646_v4, %s2982_s15 }
 0x19a   :  { %v2648_v7 = vpop.eup %2647 }
 0x19b   :  { %v570_v8 = vadd.f32 1.0, %v2648_v7  ;;  %v2650_v9 = vpop.eup %2649 }
 0x19c   :  { %v532_v10 = vadd.f32 1.0, %v2650_v9 }
 0x19d   :  { %2651 = vrcp.f32 %v570_v8  ;;  %v550_v11 = vpop.permute.xlu0 %549 }
 0x19e   :  { %2653 = vrcp.f32 %v532_v10  ;;  %v551_v13 = vrot.slane %v550_v11, 1 }
 0x1a0   :  { %v553_v19 = vsel %vm552_vm4, %v550_v11, %v551_v13 }
 0x1aa   :  { %v2652_v15 = vpop.eup %2651 }
 0x1ab   :  { %v2654_v20 = vpop.eup %2653  ;;  %v585_v22 = vmul.f32 0.0, %v2652_v15 }
 0x1ac   :  { %v555_v21 = vmul.f32 %v2654_v20, %v553_v19  ;;  %v547_v26 = vmul.f32 0.0, %v2654_v20 }
 0x20b   :  { %v588_v12 = vpop.permute.xlu1 %587 }
 0x20c   :  { %v589_v14 = vrot.slane %v588_v12, 1 }
 0x20e   :  { %v590_v16 = vsel %vm552_vm4, %v588_v12, %v589_v14 }
 0x20f   :  { %v592_v17 = vmul.f32 %v2652_v15, %v590_v16 }
 0x211   :  { %594 = vrot.lane.b32.xlu1 %v592_v17, %s2984_s17 }
 0x215   :  { %557 = vrot.lane.b32.xlu1 %v555_v21, %s2984_s17  ;;  %v712_v21 = vld [vmem:[#allocation3 + $0x6] ss:$8 sm:$0x3] }
 0x219   :  { %537 = vrot.lane.b32.xlu1 %v430_v24, %s2983_s16  ;;  %v576_v24 = vpop.permute.xlu0 %575 }
 0x21a   :  { %v577_v59 = vrot.slane %v576_v24, 1 }
 0x21c   :  { %v2556_v62 = vmul.f32 -1.442695, %v577_v59 }
 0x283   :  { %v595_v23 = vpop.permute.xlu1 %594 }
 0x284   :  { %v3189_v25 = vadd.f32 %v595_v23, %v585_v22 }
 0x286   :  { %2655 = vtanh.f32 %v3189_v25 }
 0x287   :  { %v558_v27 = vpop.permute.xlu1 %557 }
 0x288   :  { %v3192_v28 = vadd.f32 %v558_v27, %v547_v26  ;;  %v617_v27 = vld [vmem:[#allocation2 + $0x1] ss:$8 sm:$0x3] }
 0x28a   :  { %2657 = vtanh.f32 %v3192_v28 }
 0x28b   :  { %v538_v61 = vpop.permute.xlu1 %537  ;;  %2659 = vpow2.f32 %v2556_v62 }
 0x28c   :  { %v539_v63 = vrot.slane %v538_v61, 1 }
 0x28e   :  { %v2554_v1 = vmul.f32 -1.442695, %v539_v63 }
 0x290   :  { %2661 = vpow2.f32 %v2554_v1 }
 0x293   :  { %v2656_v30 = vpop.eup %2655 }
 0x294   :  { %600 = vrot.lane.b32.xlu0 %v2656_v30, %s2985_s18 }
 0x297   :  { %v2658_v58 = vpop.eup %2657 }
 0x298   :  { %563 = vrot.lane.b32.xlu0 %v2658_v58, %s2985_s18  ;;  %v2660_v2 = vpop.eup %2659 }
 0x299   :  { %v582_v3 = vadd.f32 1.0, %v2660_v2 }
 0x29b   :  { %2663 = vrcp.f32 %v582_v3 }
 0x29d   :  { %v2662_v4 = vpop.eup %2661 }
 0x29e   :  { %v544_v5 = vadd.f32 1.0, %v2662_v4 }
 0x2a0   :  { %2665 = vrcp.f32 %v544_v5 }
 0x2a8   :  { %v2664_v6 = vpop.eup %2663 }
 0x2ad   :  { %v2666_v9 = vpop.eup %2665 }
 0x306   :  { %v601_v7 = vpop.permute.xlu0 %600 }
 0x307   :  { %v3197_v8 = vmul.f32 %v2664_v6, %v601_v7 }
 0x309   :  { %2562 = vmatmul.mubr.msk.f32.vlgmr.msra.gmra.mxu1 %vm125_vm1, %v3197_v8 }
 0x30a   :  { %v564_v10 = vpop.permute.xlu0 %563  ;;  %2571 = vmatpush1.msk.msra.mxu1 %vm129_vm0, %v3056_v37  ;;  %1052 = vmatprep.mubr.f32.mxu1 %v2979_v0 }
 0x30b   :  { %v566_v11 = vmul.f32 %v2666_v9, %v564_v10  ;;  %1008 = vmatprep.subr.mxu1 %v3062_v39 }
 0x30c   :  { %1009 = vmatpush1.msra.mxu1 %v3069_v41 }
 0x30d   :  { %605 = vst.msk [vmem:[#allocation12] sm:$0x1] %vm604_vm5, %v566_v11  ;;  %2559 = vmatmul.mubr.msk.f32.vlgmr.msra.gmra.mxu0 %vm125_vm1, %v566_v11  ;;  %1010 = vmatprep.subr.mxu1 %v3076_v43 }
 0x30e   :  { %2568 = vmatpush1.msk.msra.mxu0 %vm129_vm0, %v3037_v31  ;;  %1011 = vmatpush1.msra.mxu1 %v3082_v45 }
 0x30f   :  { %914 = vmatprep.subr.mxu0 %v3039_v32  ;;  %1012 = vmatprep.subr.mxu1 %v3088_v47 }
 0x310   :  { %915 = vmatpush1.msra.mxu0 %v3044_v33  ;;  %1013 = vmatpush1.msra.mxu1 %v3094_v49 }
 0x311   :  { %916 = vmatprep.subr.mxu0 %v3048_v34  ;;  %1014 = vmatprep.subr.mxu1 %v3100_v51 }
 0x312   :  { %917 = vmatpush1.msra.mxu0 %v3054_v36  ;;  %1015 = vmatpush1.msra.mxu1 %v3106_v53 }
 0x313   :  { %918 = vmatprep.subr.mxu0 %v3059_v38  ;;  %1016 = vmatprep.subr.mxu1 %v3110_v54 }
 0x314   :  { %919 = vmatpush1.msra.mxu0 %v3065_v40  ;;  %1017 = vmatpush1.msra.mxu1 %v3114_v55 }
 0x315   :  { %920 = vmatprep.subr.mxu0 %v3072_v42  ;;  %1018 = vmatprep.subr.mxu1 %v3118_v56 }
 0x316   :  { %921 = vmatpush1.msra.mxu0 %v3079_v44  ;;  %1019 = vmatpush1.msra.mxu1 %v3122_v57 }
 0x317   :  { %922 = vmatprep.subr.mxu0 %v3085_v46  ;;  %958 = vmatprep.mubr.f32.mxu0 %v2979_v0 }
 0x318   :  { %923 = vmatpush1.msra.mxu0 %v3091_v48  ;;  %2580 = vmatprep.subr.msk.mxu1 %vm129_vm0, %v3050_v35 }
 0x319   :  { %924 = vmatprep.subr.mxu0 %v3097_v50 }
 0x31a   :  { %925 = vmatpush1.msra.mxu0 %v3103_v52 }
 0x31b   :  { %2577 = vmatprep.subr.msk.mxu0 %vm129_vm0, %v3035_v29 }
 0x3c9   :  { %v781_v12 = vpop.f32.mrf.mxu1 }
 0x3cb   :  { %v783_v13 = vpop.f32.mrf.mxu1 }
 0x3cc   :  { %v788_v14 = vcombine.low %v781_v12, %v783_v13 }
 0x3cd   :  { %v687_v15 = vpop.f32.mrf.mxu0 }
 0x3ce   :  { %v795_v16 = vrot.slane %v788_v14, %v3174_v18 }
 0x3cf   :  { %v689_v17 = vpop.f32.mrf.mxu0 }
 0x3d0   :  { %v802_v19 = vrot.slane %v795_v16, %v3174_v18  ;;  %v694_v20 = vcombine.low %v687_v15, %v689_v17 }
 0x3d2   :  { %v804_v22 = vadd.f32 %v802_v19, %v712_v21  ;;  %v701_v23 = vrot.slane %v694_v20, %v3174_v18 }
 0x3d4   :  { %2667 = vtanh.f32 %v804_v22  ;;  %v708_v26 = vrot.slane %v701_v23, %v3174_v18  ;;  %v2565_v59 = vmul.f32 -1.442695, %v804_v22 }
 0x3d6   :  { %v710_v30 = vadd.f32 %v708_v26, %v617_v27 }
 0x3d8   :  { %2669 = vtanh.f32 %v710_v30  ;;  %v2563_v61 = vmul.f32 -1.442695, %v710_v30 }
 0x3d9   :  { %2671 = vpow2.f32 %v2565_v59 }
 0x3da   :  { %2673 = vpow2.f32 %v2563_v61 }
 0x3e1   :  { %v2668_v58 = vpop.eup %2667 }
 0x3e2   :  { %862 = vrot.lane.b32.xlu1 %v2668_v58, %s2982_s15 }
 0x3e5   :  { %v2670_v24 = vpop.eup %2669 }
 0x3e6   :  { %825 = vrot.lane.b32.xlu0 %v2670_v24, %s2982_s15  ;;  %v2672_v62 = vpop.eup %2671 }
 0x3e7   :  { %v845_v63 = vadd.f32 1.0, %v2672_v62  ;;  %v2674_v1 = vpop.eup %2673 }
 0x3e8   :  { %v808_v2 = vadd.f32 1.0, %v2674_v1 }
 0x3e9   :  { %2675 = vrcp.f32 %v845_v63 }
 0x3ea   :  { %850 = vrot.lane.b32.xlu0 %v804_v22, %s2983_s16  ;;  %2677 = vrcp.f32 %v808_v2 }
 0x3f6   :  { %v2676_v5 = vpop.eup %2675 }
 0x3f7   :  { %v2678_v11 = vpop.eup %2677  ;;  %v860_v14 = vmul.f32 %v2676_v5, %v3189_v25 }
 0x3f8   :  { %v823_v17 = vmul.f32 %v2678_v11, %v3192_v28 }
 0x454   :  { %v863_v3 = vpop.permute.xlu1 %862 }
 0x455   :  { %v864_v4 = vrot.slane %v863_v3, 1 }
 0x457   :  { %v865_v6 = vsel %vm552_vm4, %v863_v3, %v864_v4 }
 0x458   :  { %v867_v7 = vmul.f32 %v2676_v5, %v865_v6  ;;  %v826_v9 = vpop.permute.xlu0 %825 }
 0x459   :  { %v827_v10 = vrot.slane %v826_v9, 1 }
 0x45a   :  { %869 = vrot.lane.b32.xlu1 %v867_v7, %s2984_s17 }
 0x45b   :  { %v828_v12 = vsel %vm552_vm4, %v826_v9, %v827_v10 }
 0x45c   :  { %v830_v13 = vmul.f32 %v2678_v11, %v828_v12  ;;  %v851_v23 = vpop.permute.xlu0 %850 }
 0x45d   :  { %v852_v25 = vrot.slane %v851_v23, 1 }
 0x45e   :  { %832 = vrot.lane.b32.xlu1 %v830_v13, %s2984_s17 }
 0x45f   :  { %v2566_v27 = vmul.f32 -1.442695, %v852_v25 }
 0x462   :  { %813 = vrot.lane.b32.xlu1 %v710_v30, %s2983_s16 }
 0x4cc   :  { %v870_v15 = vpop.permute.xlu1 %869 }
 0x4cd   :  { %v3250_v16 = vadd.f32 %v870_v15, %v860_v14  ;;  %v985_v14 = vld [vmem:[#allocation3 + $0x5] ss:$8 sm:$0x3] }
 0x4cf   :  { %2679 = vtanh.f32 %v3250_v16 }
 0x4d0   :  { %v833_v19 = vpop.permute.xlu1 %832 }
 0x4d1   :  { %v3254_v20 = vadd.f32 %v833_v19, %v823_v17 }
 0x4d3   :  { %2681 = vtanh.f32 %v3254_v20 }
 0x4d4   :  { %v814_v26 = vpop.permute.xlu1 %813  ;;  %2683 = vpow2.f32 %v2566_v27 }
 0x4d5   :  { %v815_v30 = vrot.slane %v814_v26, 1 }
 0x4d7   :  { %v2564_v58 = vmul.f32 -1.442695, %v815_v30 }
 0x4d9   :  { %2685 = vpow2.f32 %v2564_v58 }
 0x4dc   :  { %v2680_v21 = vpop.eup %2679 }
 0x4dd   :  { %875 = vrot.lane.b32.xlu0 %v2680_v21, %s2985_s18  ;;  %v890_v21 = vld [vmem:[#allocation2 + $0x2] ss:$8 sm:$0x3] }
 0x4e0   :  { %v2682_v22 = vpop.eup %2681 }
 0x4e1   :  { %838 = vrot.lane.b32.xlu0 %v2682_v22, %s2985_s18  ;;  %v2684_v28 = vpop.eup %2683 }
 0x4e2   :  { %v857_v24 = vadd.f32 1.0, %v2684_v28 }
 0x4e4   :  { %2687 = vrcp.f32 %v857_v24 }
 0x4e6   :  { %v2686_v59 = vpop.eup %2685 }
 0x4e7   :  { %v820_v61 = vadd.f32 1.0, %v2686_v59 }
 0x4e9   :  { %2689 = vrcp.f32 %v820_v61 }
 0x4f1   :  { %v2688_v62 = vpop.eup %2687 }
 0x4f6   :  { %v2690_v2 = vpop.eup %2689 }
 0x54f   :  { %v876_v63 = vpop.permute.xlu0 %875 }
 0x550   :  { %v3259_v1 = vmul.f32 %v2688_v62, %v876_v63 }
 0x552   :  { %2572 = vmatmul.mubr.msk.f32.vlgmr.msra.gmra.mxu1 %vm125_vm1, %v3259_v1 }
 0x553   :  { %v839_v3 = vpop.permute.xlu0 %838  ;;  %2581 = vmatpush1.msk.msra.mxu1 %vm129_vm0, %v3056_v37  ;;  %1325 = vmatprep.mubr.f32.mxu1 %v2979_v0 }
 0x554   :  { %v841_v4 = vmul.f32 %v2690_v2, %v839_v3  ;;  %1281 = vmatprep.subr.mxu1 %v3062_v39 }
 0x555   :  { %1282 = vmatpush1.msra.mxu1 %v3069_v41 }
 0x556   :  { %879 = vst.msk [vmem:[#allocation12 + $0x1] sm:$0x1] %vm604_vm5, %v841_v4  ;;  %2569 = vmatmul.mubr.msk.f32.vlgmr.msra.gmra.mxu0 %vm125_vm1, %v841_v4  ;;  %1283 = vmatprep.subr.mxu1 %v3076_v43 }
 0x557   :  { %2578 = vmatpush1.msk.msra.mxu0 %vm129_vm0, %v3037_v31  ;;  %1284 = vmatpush1.msra.mxu1 %v3082_v45 }
 0x558   :  { %1187 = vmatprep.subr.mxu0 %v3039_v32  ;;  %1285 = vmatprep.subr.mxu1 %v3088_v47 }
 0x559   :  { %1188 = vmatpush1.msra.mxu0 %v3044_v33  ;;  %1286 = vmatpush1.msra.mxu1 %v3094_v49 }
 0x55a   :  { %1189 = vmatprep.subr.mxu0 %v3048_v34  ;;  %1287 = vmatprep.subr.mxu1 %v3100_v51 }
 0x55b   :  { %1190 = vmatpush1.msra.mxu0 %v3054_v36  ;;  %1288 = vmatpush1.msra.mxu1 %v3106_v53 }
 0x55c   :  { %1191 = vmatprep.subr.mxu0 %v3059_v38  ;;  %1289 = vmatprep.subr.mxu1 %v3110_v54 }
 0x55d   :  { %1192 = vmatpush1.msra.mxu0 %v3065_v40  ;;  %1290 = vmatpush1.msra.mxu1 %v3114_v55 }
 0x55e   :  { %1193 = vmatprep.subr.mxu0 %v3072_v42  ;;  %1291 = vmatprep.subr.mxu1 %v3118_v56 }
 0x55f   :  { %1194 = vmatpush1.msra.mxu0 %v3079_v44  ;;  %1292 = vmatpush1.msra.mxu1 %v3122_v57 }
 0x560   :  { %1195 = vmatprep.subr.mxu0 %v3085_v46  ;;  %1231 = vmatprep.mubr.f32.mxu0 %v2979_v0 }
 0x561   :  { %1196 = vmatpush1.msra.mxu0 %v3091_v48  ;;  %2590 = vmatprep.subr.msk.mxu1 %vm129_vm0, %v3050_v35 }
 0x562   :  { %1197 = vmatprep.subr.mxu0 %v3097_v50 }
 0x563   :  { %1198 = vmatpush1.msra.mxu0 %v3103_v52 }
 0x564   :  { %2587 = vmatprep.subr.msk.mxu0 %vm129_vm0, %v3035_v29 }
 0x612   :  { %v1054_v5 = vpop.f32.mrf.mxu1 }
 0x614   :  { %v1056_v6 = vpop.f32.mrf.mxu1 }
 0x615   :  { %v1061_v7 = vcombine.low %v1054_v5, %v1056_v6 }
 0x616   :  { %v960_v9 = vpop.f32.mrf.mxu0 }
 0x617   :  { %v1068_v10 = vrot.slane %v1061_v7, %v3174_v18 }
 0x618   :  { %v962_v11 = vpop.f32.mrf.mxu0 }
 0x619   :  { %v1075_v12 = vrot.slane %v1068_v10, %v3174_v18  ;;  %v967_v13 = vcombine.low %v960_v9, %v962_v11 }
 0x61b   :  { %v1077_v15 = vadd.f32 %v1075_v12, %v985_v14  ;;  %v974_v17 = vrot.slane %v967_v13, %v3174_v18 }
 0x61d   :  { %2691 = vtanh.f32 %v1077_v15  ;;  %v981_v19 = vrot.slane %v974_v17, %v3174_v18  ;;  %v2575_v26 = vmul.f32 -1.442695, %v1077_v15 }
 0x61f   :  { %v983_v22 = vadd.f32 %v981_v19, %v890_v21 }
 0x621   :  { %2693 = vtanh.f32 %v983_v22  ;;  %v2573_v27 = vmul.f32 -1.442695, %v983_v22 }
 0x622   :  { %2695 = vpow2.f32 %v2575_v26 }
 0x623   :  { %2697 = vpow2.f32 %v2573_v27 }
 0x62a   :  { %v2692_v23 = vpop.eup %2691 }
 0x62b   :  { %1135 = vrot.lane.b32.xlu1 %v2692_v23, %s2982_s15 }
 0x62e   :  { %v2694_v25 = vpop.eup %2693 }
 0x62f   :  { %1098 = vrot.lane.b32.xlu0 %v2694_v25, %s2982_s15  ;;  %v2696_v30 = vpop.eup %2695 }
 0x630   :  { %v1118_v58 = vadd.f32 1.0, %v2696_v30  ;;  %v2698_v28 = vpop.eup %2697 }
 0x631   :  { %v1081_v24 = vadd.f32 1.0, %v2698_v28 }
 0x632   :  { %2699 = vrcp.f32 %v1118_v58 }
 0x633   :  { %1123 = vrot.lane.b32.xlu0 %v1077_v15, %s2983_s16  ;;  %2701 = vrcp.f32 %v1081_v24 }
 0x63f   :  { %v2700_v62 = vpop.eup %2699 }
 0x640   :  { %v2702_v5 = vpop.eup %2701  ;;  %v1133_v9 = vmul.f32 %v2700_v62, %v3250_v16 }
 0x641   :  { %v1096_v12 = vmul.f32 %v2702_v5, %v3254_v20 }
 0x69d   :  { %v1136_v59 = vpop.permute.xlu1 %1135 }
 0x69e   :  { %v1137_v61 = vrot.slane %v1136_v59, 1 }
 0x6a0   :  { %v1138_v63 = vsel %vm552_vm4, %v1136_v59, %v1137_v61 }
 0x6a1   :  { %v1140_v2 = vmul.f32 %v2700_v62, %v1138_v63  ;;  %v1099_v3 = vpop.permute.xlu0 %1098 }
 0x6a2   :  { %v1100_v4 = vrot.slane %v1099_v3, 1 }
 0x6a3   :  { %1142 = vrot.lane.b32.xlu1 %v1140_v2, %s2984_s17 }
 0x6a4   :  { %v1101_v6 = vsel %vm552_vm4, %v1099_v3, %v1100_v4 }
 0x6a5   :  { %v1103_v7 = vmul.f32 %v2702_v5, %v1101_v6  ;;  %v1124_v19 = vpop.permute.xlu0 %1123 }
 0x6a6   :  { %v1125_v16 = vrot.slane %v1124_v19, 1 }
 0x6a7   :  { %1105 = vrot.lane.b32.xlu1 %v1103_v7, %s2984_s17 }
 0x6ab   :  { %1086 = vrot.lane.b32.xlu1 %v983_v22, %s2983_s16  ;;  %v2576_v22 = vmul.f32 -1.442695, %v1125_v16 }
 0x715   :  { %v1143_v10 = vpop.permute.xlu1 %1142 }
 0x716   :  { %v3312_v11 = vadd.f32 %v1143_v10, %v1133_v9 }
 0x718   :  { %2703 = vtanh.f32 %v3312_v11 }
 0x719   :  { %v1106_v13 = vpop.permute.xlu1 %1105 }
 0x71a   :  { %v3316_v14 = vadd.f32 %v1106_v13, %v1096_v12 }
 0x71c   :  { %2705 = vtanh.f32 %v3316_v14 }
 0x71d   :  { %v1087_v21 = vpop.permute.xlu1 %1086  ;;  %2707 = vpow2.f32 %v2576_v22 }
 0x71e   :  { %v1088_v23 = vrot.slane %v1087_v21, 1 }
 0x720   :  { %v2574_v25 = vmul.f32 -1.442695, %v1088_v23 }
 0x722   :  { %2709 = vpow2.f32 %v2574_v25 }
 0x725   :  { %v2704_v15 = vpop.eup %2703 }
 0x726   :  { %1148 = vrot.lane.b32.xlu0 %v2704_v15, %s2985_s18 }
 0x729   :  { %v2706_v17 = vpop.eup %2705 }
 0x72a   :  { %1111 = vrot.lane.b32.xlu0 %v2706_v17, %s2985_s18  ;;  %v2708_v20 = vpop.eup %2707 }
 0x72b   :  { %v1130_v26 = vadd.f32 1.0, %v2708_v20 }
 0x72d   :  { %2711 = vrcp.f32 %v1130_v26 }
 0x72f   :  { %v2710_v27 = vpop.eup %2709 }
 0x730   :  { %v1093_v30 = vadd.f32 1.0, %v2710_v27 }
 0x732   :  { %2713 = vrcp.f32 %v1093_v30 }
 0x73a   :  { %v2712_v58 = vpop.eup %2711 }
 0x73f   :  { %v2714_v59 = vpop.eup %2713 }
 0x798   :  { %v1149_v28 = vpop.permute.xlu0 %1148 }
 0x799   :  { %v3321_v24 = vmul.f32 %v2712_v58, %v1149_v28 }
 0x79b   :  { %2582 = vmatmul.mubr.msk.f32.vlgmr.msra.gmra.mxu1 %vm125_vm1, %v3321_v24 }
 0x79c   :  { %v1112_v61 = vpop.permute.xlu0 %1111  ;;  %2591 = vmatpush1.msk.msra.mxu1 %vm129_vm0, %v3056_v37  ;;  %1598 = vmatprep.mubr.f32.mxu1 %v2979_v0 }
 0x79d   :  { %v1114_v62 = vmul.f32 %v2714_v59, %v1112_v61  ;;  %1554 = vmatprep.subr.mxu1 %v3062_v39 }
 0x79e   :  { %1555 = vmatpush1.msra.mxu1 %v3069_v41 }
 0x79f   :  { %1152 = vst.msk [vmem:[#allocation12 + $0x2] sm:$0x1] %vm604_vm5, %v1114_v62  ;;  %2579 = vmatmul.mubr.msk.f32.vlgmr.msra.gmra.mxu0 %vm125_vm1, %v1114_v62  ;;  %1556 = vmatprep.subr.mxu1 %v3076_v43  ;;  %v1163_v43 = vld [vmem:[#allocation2 + $0x3] ss:$8 sm:$0x3] }
 0x7a0   :  { %2588 = vmatpush1.msk.msra.mxu0 %vm129_vm0, %v3037_v31  ;;  %1557 = vmatpush1.msra.mxu1 %v3082_v45  ;;  %v3387_v62 = vld [vmem:[#allocation10 + $0x60] sm:$0x3] }
 0x7a1   :  { %1460 = vmatprep.subr.mxu0 %v3039_v32  ;;  %1558 = vmatprep.subr.mxu1 %v3088_v47 }
 0x7a2   :  { %1461 = vmatpush1.msra.mxu0 %v3044_v33  ;;  %1559 = vmatpush1.msra.mxu1 %v3094_v49 }
 0x7a3   :  { %1462 = vmatprep.subr.mxu0 %v3048_v34  ;;  %1560 = vmatprep.subr.mxu1 %v3100_v51 }
 0x7a4   :  { %1463 = vmatpush1.msra.mxu0 %v3054_v36  ;;  %1561 = vmatpush1.msra.mxu1 %v3106_v53 }
 0x7a5   :  { %1464 = vmatprep.subr.mxu0 %v3059_v38  ;;  %1562 = vmatprep.subr.mxu1 %v3110_v54 }
 0x7a6   :  { %1465 = vmatpush1.msra.mxu0 %v3065_v40  ;;  %1563 = vmatpush1.msra.mxu1 %v3114_v55  ;;  %v1258_v40 = vld [vmem:[#allocation3 + $0x4] ss:$8 sm:$0x3] }
 0x7a7   :  { %1466 = vmatprep.subr.mxu0 %v3072_v42  ;;  %1564 = vmatprep.subr.mxu1 %v3118_v56 }
 0x7a8   :  { %1467 = vmatpush1.msra.mxu0 %v3079_v44  ;;  %1565 = vmatpush1.msra.mxu1 %v3122_v57 }
 0x7a9   :  { %1468 = vmatprep.subr.mxu0 %v3085_v46  ;;  %1504 = vmatprep.mubr.f32.mxu0 %v2979_v0 }
 0x7aa   :  { %1469 = vmatpush1.msra.mxu0 %v3091_v48  ;;  %2600 = vmatprep.subr.msk.mxu1 %vm129_vm0, %v3050_v35 }
 0x7ab   :  { %1470 = vmatprep.subr.mxu0 %v3097_v50 }
 0x7ac   :  { %1471 = vmatpush1.msra.mxu0 %v3103_v52 }
 0x7ad   :  { %2597 = vmatprep.subr.msk.mxu0 %vm129_vm0, %v3035_v29 }
 0x85b   :  { %v1327_v31 = vpop.f32.mrf.mxu1 }
 0x85d   :  { %v1329_v32 = vpop.f32.mrf.mxu1 }
 0x85e   :  { %v1334_v33 = vcombine.low %v1327_v31, %v1329_v32  ;;  %v3392_v32 = vld [vmem:[#allocation10 + $0x58] sm:$0xff] }
 0x85f   :  { %v1233_v34 = vpop.f32.mrf.mxu0 }
 0x860   :  { %v1341_v36 = vrot.slane %v1334_v33, %v3174_v18  ;;  %v3395_v33 = vld [vmem:[#allocation10 + $0x50] sm:$0xff] }
 0x861   :  { %v1235_v37 = vpop.f32.mrf.mxu0 }
 0x862   :  { %v1348_v38 = vrot.slane %v1341_v36, %v3174_v18  ;;  %v1240_v39 = vcombine.low %v1233_v34, %v1235_v37  ;;  %v3400_v34 = vld [vmem:[#allocation10 + $0x48] sm:$0xff]  ;;  %v3403_v36 = vld [vmem:[#allocation9 + $0x60] sm:$0x3]  ;;  %v3407_v37 = vld [vmem:[#allocation10 + $0x40] sm:$0xff] }
 0x864   :  { %v1350_v41 = vadd.f32 %v1348_v38, %v1258_v40  ;;  %v1247_v35 = vrot.slane %v1240_v39, %v3174_v18  ;;  %v3410_v38 = vld [vmem:[#allocation9 + $0x58] sm:$0xff]  ;;  %v3413_v39 = vld [vmem:[#allocation10 + $0x38] sm:$0xff]  ;;  %v3416_v40 = vld [vmem:[#allocation9 + $0x50] sm:$0xff] }
 0x866   :  { %2715 = vtanh.f32 %v1350_v41  ;;  %v1254_v42 = vrot.slane %v1247_v35, %v3174_v18  ;;  %v2585_v46 = vmul.f32 -1.442695, %v1350_v41  ;;  %v3422_v35 = vld [vmem:[#allocation9 + $0x48] sm:$0xff] }
 0x868   :  { %v1256_v44 = vadd.f32 %v1254_v42, %v1163_v43  ;;  %v3425_v42 = vld [vmem:[#allocation10 + $0x28] sm:$0xff]  ;;  %v3428_v43 = vld [vmem:[#allocation9 + $0x40] sm:$0xff] }
 0x86a   :  { %2717 = vtanh.f32 %v1256_v44  ;;  %v2583_v47 = vmul.f32 -1.442695, %v1256_v44 }
 0x86b   :  { %2719 = vpow2.f32 %v2585_v46  ;;  %v3440_v46 = vld [vmem:[#allocation9 + $0x30] sm:$0xff] }
 0x86c   :  { %2721 = vpow2.f32 %v2583_v47  ;;  %v3443_v47 = vld [vmem:[#allocation10 + $0x10] sm:$0xff] }
 0x873   :  { %v2716_v29 = vpop.eup %2715 }
 0x874   :  { %1408 = vrot.lane.b32.xlu1 %v2716_v29, %s2982_s15  ;;  %v3434_v29 = vld [vmem:[#allocation9 + $0x38] sm:$0xff] }
 0x877   :  { %v2718_v45 = vpop.eup %2717 }
 0x878   :  { %1371 = vrot.lane.b32.xlu0 %v2718_v45, %s2982_s15  ;;  %v2720_v48 = vpop.eup %2719  ;;  %v3437_v45 = vld [vmem:[#allocation10 + $0x18] sm:$0xff] }
 0x879   :  { %v1391_v49 = vadd.f32 1.0, %v2720_v48  ;;  %v2722_v50 = vpop.eup %2721  ;;  %v3446_v48 = vld [vmem:[#allocation9 + $0x28] sm:$0xff] }
 0x87a   :  { %v1354_v51 = vadd.f32 1.0, %v2722_v50  ;;  %v3454_v50 = vld [vmem:[#allocation9 + $0x18] sm:$0xff] }
 0x87b   :  { %2723 = vrcp.f32 %v1391_v49  ;;  %v3450_v49 = vld [vmem:[#allocation9 + $0x20] sm:$0xff] }
 0x87c   :  { %1396 = vrot.lane.b32.xlu0 %v1350_v41, %s2983_s16  ;;  %2725 = vrcp.f32 %v1354_v51  ;;  %v3419_v41 = vld [vmem:[#allocation10 + $0x30] sm:$0xff]  ;;  %v3458_v51 = vld [vmem:[#allocation9 + $0x10] sm:$0xff] }
 0x888   :  { %v2724_v54 = vpop.eup %2723 }
 0x889   :  { %v2726_v4 = vpop.eup %2725  ;;  %v1406_v7 = vmul.f32 %v2724_v54, %v3312_v11 }
 0x88a   :  { %v1369_v12 = vmul.f32 %v2726_v4, %v3316_v14 }
 0x8e6   :  { %v1409_v52 = vpop.permute.xlu1 %1408 }
 0x8e7   :  { %v1410_v53 = vrot.slane %v1409_v52, 1 }
 0x8e9   :  { %v1411_v55 = vsel %vm552_vm4, %v1409_v52, %v1410_v53  ;;  %v3461_v52 = vld [vmem:[#allocation10 + $0x68] sm:$0x3]  ;;  %v3471_v53 = vld [vmem:[#allocation9 + $0x68] sm:$0x3] }
 0x8ea   :  { %v1413_v63 = vmul.f32 %v2724_v54, %v1411_v55  ;;  %v1372_v2 = vpop.permute.xlu0 %1371 }
 0x8eb   :  { %v1373_v3 = vrot.slane %v1372_v2, 1 }
 0x8ec   :  { %1415 = vrot.lane.b32.xlu1 %v1413_v63, %s2984_s17 }
 0x8ed   :  { %v1374_v5 = vsel %vm552_vm4, %v1372_v2, %v1373_v3 }
 0x8ee   :  { %v1376_v6 = vmul.f32 %v2726_v4, %v1374_v5  ;;  %v1397_v16 = vpop.permute.xlu0 %1396 }
 0x8ef   :  { %v1398_v11 = vrot.slane %v1397_v16, 1 }
 0x8f0   :  { %1378 = vrot.lane.b32.xlu1 %v1376_v6, %s2984_s17 }
 0x8f1   :  { %v2586_v22 = vmul.f32 -1.442695, %v1398_v11 }
 0x8f4   :  { %1359 = vrot.lane.b32.xlu1 %v1256_v44, %s2983_s16  ;;  %v3431_v44 = vld [vmem:[#allocation10 + $0x20] sm:$0xff] }
 0x95e   :  { %v1416_v9 = vpop.permute.xlu1 %1415 }
 0x95f   :  { %v3374_v10 = vadd.f32 %v1416_v9, %v1406_v7  ;;  %v1531_v7 = vld [vmem:[#allocation3 + $0x3] ss:$8 sm:$0x3] }
 0x961   :  { %2727 = vtanh.f32 %v3374_v10 }
 0x962   :  { %v1379_v13 = vpop.permute.xlu1 %1378 }
 0x963   :  { %v3378_v15 = vadd.f32 %v1379_v13, %v1369_v12 }
 0x965   :  { %2729 = vtanh.f32 %v3378_v15 }
 0x966   :  { %v1360_v21 = vpop.permute.xlu1 %1359  ;;  %2731 = vpow2.f32 %v2586_v22 }
 0x967   :  { %v1361_v23 = vrot.slane %v1360_v21, 1 }
 0x969   :  { %v2584_v25 = vmul.f32 -1.442695, %v1361_v23 }
 0x96b   :  { %2733 = vpow2.f32 %v2584_v25 }
 0x96e   :  { %v2728_v17 = vpop.eup %2727 }
 0x96f   :  { %1421 = vrot.lane.b32.xlu0 %v2728_v17, %s2985_s18  ;;  %v1436_v17 = vld [vmem:[#allocation2 + $0x4] ss:$8 sm:$0x3] }
 0x972   :  { %v2730_v19 = vpop.eup %2729 }
 0x973   :  { %1384 = vrot.lane.b32.xlu0 %v2730_v19, %s2985_s18  ;;  %v2732_v14 = vpop.eup %2731 }
 0x974   :  { %v1403_v20 = vadd.f32 1.0, %v2732_v14 }
 0x976   :  { %2735 = vrcp.f32 %v1403_v20 }
 0x978   :  { %v2734_v26 = vpop.eup %2733 }
 0x979   :  { %v1366_v27 = vadd.f32 1.0, %v2734_v26 }
 0x97b   :  { %2737 = vrcp.f32 %v1366_v27 }
 0x983   :  { %v2736_v30 = vpop.eup %2735 }
 0x988   :  { %v2738_v59 = vpop.eup %2737 }
 0x9e1   :  { %v1422_v58 = vpop.permute.xlu0 %1421 }
 0x9e2   :  { %v3383_v28 = vmul.f32 %v2736_v30, %v1422_v58 }
 0x9e4   :  { %2592 = vmatmul.mubr.msk.f32.vlgmr.msra.gmra.mxu1 %vm125_vm1, %v3383_v28 }
 0x9e5   :  { %v1385_v61 = vpop.permute.xlu0 %1384  ;;  %2601 = vmatpush1.msk.msra.mxu1 %vm129_vm0, %v3387_v62  ;;  %1871 = vmatprep.mubr.f32.mxu1 %v2979_v0 }
 0x9e6   :  { %v1387_v31 = vmul.f32 %v2738_v59, %v1385_v61  ;;  %1827 = vmatprep.subr.mxu1 %v3392_v32 }
 0x9e7   :  { %1828 = vmatpush1.msra.mxu1 %v3395_v33 }
 0x9e8   :  { %1425 = vst.msk [vmem:[#allocation12 + $0x3] sm:$0x1] %vm604_vm5, %v1387_v31  ;;  %2589 = vmatmul.mubr.msk.f32.vlgmr.msra.gmra.mxu0 %vm125_vm1, %v1387_v31  ;;  %1829 = vmatprep.subr.mxu1 %v3400_v34 }
 0x9e9   :  { %2598 = vmatpush1.msk.msra.mxu0 %vm129_vm0, %v3403_v36  ;;  %1830 = vmatpush1.msra.mxu1 %v3407_v37 }
 0x9ea   :  { %1733 = vmatprep.subr.mxu0 %v3410_v38  ;;  %1831 = vmatprep.subr.mxu1 %v3413_v39 }
 0x9eb   :  { %1734 = vmatpush1.msra.mxu0 %v3416_v40  ;;  %1832 = vmatpush1.msra.mxu1 %v3419_v41 }
 0x9ec   :  { %1735 = vmatprep.subr.mxu0 %v3422_v35  ;;  %1833 = vmatprep.subr.mxu1 %v3425_v42 }
 0x9ed   :  { %1736 = vmatpush1.msra.mxu0 %v3428_v43  ;;  %1834 = vmatpush1.msra.mxu1 %v3431_v44 }
 0x9ee   :  { %1737 = vmatprep.subr.mxu0 %v3434_v29  ;;  %1835 = vmatprep.subr.mxu1 %v3437_v45 }
 0x9ef   :  { %1738 = vmatpush1.msra.mxu0 %v3440_v46  ;;  %1836 = vmatpush1.msra.mxu1 %v3443_v47 }
 0x9f0   :  { %1739 = vmatprep.subr.mxu0 %v3446_v48  ;;  %1837 = vmatprep.subr.mxu1 %v3118_v56  ;;  %v3465_v56 = vld [vmem:[#allocation9 + $0x8] sm:$0xff] }
 0x9f1   :  { %1740 = vmatpush1.msra.mxu0 %v3450_v49  ;;  %1838 = vmatpush1.msra.mxu1 %v3122_v57  ;;  %v3468_v57 = vld [vmem:[#allocation9] sm:$0xff] }
 0x9f2   :  { %1741 = vmatprep.subr.mxu0 %v3454_v50  ;;  %1777 = vmatprep.mubr.f32.mxu0 %v2979_v0 }
 0x9f3   :  { %1742 = vmatpush1.msra.mxu0 %v3458_v51  ;;  %2610 = vmatprep.subr.msk.mxu1 %vm129_vm0, %v3461_v52 }
 0x9f4   :  { %1743 = vmatprep.subr.mxu0 %v3465_v56 }
 0x9f5   :  { %1744 = vmatpush1.msra.mxu0 %v3468_v57 }
 0x9f6   :  { %2607 = vmatprep.subr.msk.mxu0 %vm129_vm0, %v3471_v53 }
 0xaa4   :  { %v1600_v54 = vpop.f32.mrf.mxu1 }
 0xaa6   :  { %v1602_v55 = vpop.f32.mrf.mxu1 }
 0xaa7   :  { %v1607_v63 = vcombine.low %v1600_v54, %v1602_v55 }
 0xaa8   :  { %v1506_v2 = vpop.f32.mrf.mxu0 }
 0xaa9   :  { %v1614_v3 = vrot.slane %v1607_v63, %v3174_v18 }
 0xaaa   :  { %v1508_v4 = vpop.f32.mrf.mxu0 }
 0xaab   :  { %v1621_v5 = vrot.slane %v1614_v3, %v3174_v18  ;;  %v1513_v6 = vcombine.low %v1506_v2, %v1508_v4 }
 0xaad   :  { %v1623_v9 = vadd.f32 %v1621_v5, %v1531_v7  ;;  %v1520_v12 = vrot.slane %v1513_v6, %v3174_v18 }
 0xaaf   :  { %2739 = vtanh.f32 %v1623_v9  ;;  %v1527_v13 = vrot.slane %v1520_v12, %v3174_v18  ;;  %v2595_v21 = vmul.f32 -1.442695, %v1623_v9 }
 0xab1   :  { %v1529_v19 = vadd.f32 %v1527_v13, %v1436_v17 }
 0xab3   :  { %2741 = vtanh.f32 %v1529_v19  ;;  %v2593_v22 = vmul.f32 -1.442695, %v1529_v19 }
 0xab4   :  { %2743 = vpow2.f32 %v2595_v21 }
 0xab5   :  { %2745 = vpow2.f32 %v2593_v22 }
 0xabc   :  { %v2740_v16 = vpop.eup %2739 }
 0xabd   :  { %1681 = vrot.lane.b32.xlu1 %v2740_v16, %s2982_s15 }
 0xac0   :  { %v2742_v11 = vpop.eup %2741 }
 0xac1   :  { %1644 = vrot.lane.b32.xlu0 %v2742_v11, %s2982_s15  ;;  %v2744_v23 = vpop.eup %2743 }
 0xac2   :  { %v1664_v25 = vadd.f32 1.0, %v2744_v23  ;;  %v2746_v14 = vpop.eup %2745 }
 0xac3   :  { %v1627_v20 = vadd.f32 1.0, %v2746_v14 }
 0xac4   :  { %2747 = vrcp.f32 %v1664_v25 }
 0xac5   :  { %1669 = vrot.lane.b32.xlu0 %v1623_v9, %s2983_s16  ;;  %2749 = vrcp.f32 %v1627_v20 }
 0xad1   :  { %v2748_v30 = vpop.eup %2747 }
 0xad2   :  { %v2750_v54 = vpop.eup %2749  ;;  %v1679_v2 = vmul.f32 %v2748_v30, %v3374_v10 }
 0xad3   :  { %v1642_v5 = vmul.f32 %v2750_v54, %v3378_v15 }
 0xb2f   :  { %v1682_v26 = vpop.permute.xlu1 %1681 }
 0xb30   :  { %v1683_v27 = vrot.slane %v1682_v26, 1 }
 0xb32   :  { %v1684_v58 = vsel %vm552_vm4, %v1682_v26, %v1683_v27 }
 0xb33   :  { %v1686_v59 = vmul.f32 %v2748_v30, %v1684_v58  ;;  %v1645_v61 = vpop.permute.xlu0 %1644  ;;  %v3527_v58 = vld [vmem:[#allocation10 + $0x8] sm:$0xff] }
 0xb34   :  { %v1646_v31 = vrot.slane %v1645_v61, 1 }
 0xb35   :  { %1688 = vrot.lane.b32.xlu1 %v1686_v59, %s2984_s17  ;;  %v3531_v59 = vld [vmem:[#allocation10] sm:$0xff] }
 0xb36   :  { %v1647_v55 = vsel %vm552_vm4, %v1645_v61, %v1646_v31 }
 0xb37   :  { %v1649_v63 = vmul.f32 %v2750_v54, %v1647_v55  ;;  %v1670_v13 = vpop.permute.xlu0 %1669 }
 0xb38   :  { %v1671_v10 = vrot.slane %v1670_v13, 1  ;;  %v1709_v13 = vld [vmem:[#allocation2 + $0x5] ss:$8 sm:$0x3] }
 0xb39   :  { %1651 = vrot.lane.b32.xlu1 %v1649_v63, %s2984_s17 }
 0xb3d   :  { %1632 = vrot.lane.b32.xlu1 %v1529_v19, %s2983_s16  ;;  %v2596_v19 = vmul.f32 -1.442695, %v1671_v10 }
 0xba7   :  { %v1689_v3 = vpop.permute.xlu1 %1688 }
 0xba8   :  { %v3488_v4 = vadd.f32 %v1689_v3, %v1679_v2 }
 0xbaa   :  { %2751 = vtanh.f32 %v3488_v4 }
 0xbab   :  { %v1652_v6 = vpop.permute.xlu1 %1651 }
 0xbac   :  { %v3492_v7 = vadd.f32 %v1652_v6, %v1642_v5  ;;  %v1804_v6 = vld [vmem:[#allocation3 + $0x2] ss:$8 sm:$0x3] }
 0xbae   :  { %2753 = vtanh.f32 %v3492_v7 }
 0xbaf   :  { %v1633_v17 = vpop.permute.xlu1 %1632  ;;  %2755 = vpow2.f32 %v2596_v19 }
 0xbb0   :  { %v1634_v16 = vrot.slane %v1633_v17, 1 }
 0xbb2   :  { %v2594_v11 = vmul.f32 -1.442695, %v1634_v16 }
 0xbb4   :  { %2757 = vpow2.f32 %v2594_v11 }
 0xbb7   :  { %v2752_v9 = vpop.eup %2751 }
 0xbb8   :  { %1694 = vrot.lane.b32.xlu0 %v2752_v9, %s2985_s18 }
 0xbbb   :  { %v2754_v12 = vpop.eup %2753 }
 0xbbc   :  { %1657 = vrot.lane.b32.xlu0 %v2754_v12, %s2985_s18  ;;  %v2756_v15 = vpop.eup %2755 }
 0xbbd   :  { %v1676_v21 = vadd.f32 1.0, %v2756_v15 }
 0xbbf   :  { %2759 = vrcp.f32 %v1676_v21 }
 0xbc1   :  { %v2758_v22 = vpop.eup %2757 }
 0xbc2   :  { %v1639_v23 = vadd.f32 1.0, %v2758_v22 }
 0xbc4   :  { %2761 = vrcp.f32 %v1639_v23 }
 0xbcc   :  { %v2760_v25 = vpop.eup %2759 }
 0xbd1   :  { %v2762_v26 = vpop.eup %2761 }
 0xc2a   :  { %v1695_v14 = vpop.permute.xlu0 %1694 }
 0xc2b   :  { %v3497_v20 = vmul.f32 %v2760_v25, %v1695_v14 }
 0xc2d   :  { %2602 = vmatmul.mubr.msk.f32.vlgmr.msra.gmra.mxu1 %vm125_vm1, %v3497_v20 }
 0xc2e   :  { %v1658_v27 = vpop.permute.xlu0 %1657  ;;  %2611 = vmatpush1.msk.msra.mxu1 %vm129_vm0, %v3387_v62  ;;  %2144 = vmatprep.mubr.f32.mxu1 %v2979_v0 }
 0xc2f   :  { %v3504_v30 = vmul.f32 %v2762_v26, %v1658_v27  ;;  %2100 = vmatprep.subr.mxu1 %v3392_v32 }
 0xc30   :  { %2101 = vmatpush1.msra.mxu1 %v3395_v33 }
 0xc31   :  { %2599 = vmatmul.mubr.msk.f32.vlgmr.msra.gmra.mxu0 %vm125_vm1, %v3504_v30  ;;  %2102 = vmatprep.subr.mxu1 %v3400_v34 }
 0xc32   :  { %2608 = vmatpush1.msk.msra.mxu0 %vm129_vm0, %v3403_v36  ;;  %2103 = vmatpush1.msra.mxu1 %v3407_v37 }
 0xc33   :  { %2006 = vmatprep.subr.mxu0 %v3410_v38  ;;  %2104 = vmatprep.subr.mxu1 %v3413_v39 }
 0xc34   :  { %2007 = vmatpush1.msra.mxu0 %v3416_v40  ;;  %2105 = vmatpush1.msra.mxu1 %v3419_v41 }
 0xc35   :  { %2008 = vmatprep.subr.mxu0 %v3422_v35  ;;  %2106 = vmatprep.subr.mxu1 %v3425_v42 }
 0xc36   :  { %2009 = vmatpush1.msra.mxu0 %v3428_v43  ;;  %2107 = vmatpush1.msra.mxu1 %v3431_v44 }
 0xc37   :  { %2010 = vmatprep.subr.mxu0 %v3434_v29  ;;  %2108 = vmatprep.subr.mxu1 %v3437_v45 }
 0xc38   :  { %2011 = vmatpush1.msra.mxu0 %v3440_v46  ;;  %2109 = vmatpush1.msra.mxu1 %v3443_v47 }
 0xc39   :  { %2012 = vmatprep.subr.mxu0 %v3446_v48  ;;  %2110 = vmatprep.subr.mxu1 %v3527_v58 }
 0xc3a   :  { %2013 = vmatpush1.msra.mxu0 %v3450_v49  ;;  %2111 = vmatpush1.msra.mxu1 %v3531_v59 }
 0xc3b   :  { %2014 = vmatprep.subr.mxu0 %v3454_v50  ;;  %2050 = vmatprep.mubr.f32.mxu0 %v2979_v0 }
 0xc3c   :  { %2015 = vmatpush1.msra.mxu0 %v3458_v51  ;;  %2620 = vmatprep.subr.msk.mxu1 %vm129_vm0, %v3461_v52 }
 0xc3d   :  { %2016 = vmatprep.subr.mxu0 %v3465_v56 }
 0xc3e   :  { %2017 = vmatpush1.msra.mxu0 %v3468_v57 }
 0xc3f   :  { %2617 = vmatprep.subr.msk.mxu0 %vm129_vm0, %v3471_v53 }
 0xced   :  { %v1873_v61 = vpop.f32.mrf.mxu1 }
 0xcef   :  { %v1875_v31 = vpop.f32.mrf.mxu1 }
 0xcf0   :  { %v1880_v54 = vcombine.low %v1873_v61, %v1875_v31 }
 0xcf1   :  { %v1779_v55 = vpop.f32.mrf.mxu0 }
 0xcf2   :  { %v1887_v63 = vrot.slane %v1880_v54, %v3174_v18 }
 0xcf3   :  { %v1781_v2 = vpop.f32.mrf.mxu0 }
 0xcf4   :  { %v1894_v3 = vrot.slane %v1887_v63, %v3174_v18  ;;  %v1786_v5 = vcombine.low %v1779_v55, %v1781_v2 }
 0xcf6   :  { %v1896_v9 = vadd.f32 %v1894_v3, %v1804_v6  ;;  %v1793_v52 = vrot.slane %v1786_v5, %v3174_v18 }
 0xcf8   :  { %2763 = vtanh.f32 %v1896_v9  ;;  %v1800_v12 = vrot.slane %v1793_v52, %v3174_v18  ;;  %v2605_v19 = vmul.f32 -1.442695, %v1896_v9 }
 0xcfa   :  { %v1802_v10 = vadd.f32 %v1800_v12, %v1709_v13 }
 0xcfc   :  { %2765 = vtanh.f32 %v1802_v10  ;;  %v2603_v16 = vmul.f32 -1.442695, %v1802_v10 }
 0xcfd   :  { %2767 = vpow2.f32 %v2605_v19 }
 0xcfe   :  { %2769 = vpow2.f32 %v2603_v16 }
 0xd05   :  { %v2764_v53 = vpop.eup %2763 }
 0xd06   :  { %1954 = vrot.lane.b32.xlu1 %v2764_v53, %s2982_s15 }
 0xd09   :  { %v2766_v17 = vpop.eup %2765 }
 0xd0a   :  { %1917 = vrot.lane.b32.xlu0 %v2766_v17, %s2982_s15  ;;  %v2768_v11 = vpop.eup %2767 }
 0xd0b   :  { %v1937_v15 = vadd.f32 1.0, %v2768_v11  ;;  %v2770_v21 = vpop.eup %2769 }
 0xd0c   :  { %v1900_v22 = vadd.f32 1.0, %v2770_v21 }
 0xd0d   :  { %2771 = vrcp.f32 %v1937_v15 }
 0xd0e   :  { %1942 = vrot.lane.b32.xlu0 %v1896_v9, %s2983_s16  ;;  %2773 = vrcp.f32 %v1900_v22 }
 0xd1a   :  { %v2772_v14 = vpop.eup %2771 }
 0xd1b   :  { %v2774_v54 = vpop.eup %2773  ;;  %v1952_v2 = vmul.f32 %v2772_v14, %v3488_v4 }
 0xd1c   :  { %v1915_v6 = vmul.f32 %v2774_v54, %v3492_v7 }
 0xd78   :  { %v1955_v23 = vpop.permute.xlu1 %1954 }
 0xd79   :  { %v1956_v25 = vrot.slane %v1955_v23, 1 }
 0xd7b   :  { %v1957_v26 = vsel %vm552_vm4, %v1955_v23, %v1956_v25 }
 0xd7c   :  { %v1959_v27 = vmul.f32 %v2772_v14, %v1957_v26  ;;  %v1918_v61 = vpop.permute.xlu0 %1917 }
 0xd7d   :  { %v1919_v31 = vrot.slane %v1918_v61, 1 }
 0xd7e   :  { %1961 = vrot.lane.b32.xlu1 %v1959_v27, %s2984_s17 }
 0xd7f   :  { %v1920_v55 = vsel %vm552_vm4, %v1918_v61, %v1919_v31 }
 0xd80   :  { %v1922_v63 = vmul.f32 %v2774_v54, %v1920_v55 }
 0xd82   :  { %1924 = vrot.lane.b32.xlu1 %v1922_v63, %s2984_s17 }
 0xd86   :  { %1905 = vrot.lane.b32.xlu1 %v1802_v10, %s2983_s16  ;;  %v1943_v10 = vpop.permute.xlu0 %1942 }
 0xd87   :  { %v1944_v4 = vrot.slane %v1943_v10, 1 }
 0xd89   :  { %v2606_v17 = vmul.f32 -1.442695, %v1944_v4 }
 0xdf0   :  { %v1962_v3 = vpop.permute.xlu1 %1961 }
 0xdf1   :  { %v3556_v5 = vadd.f32 %v1962_v3, %v1952_v2 }
 0xdf3   :  { %2775 = vtanh.f32 %v3556_v5 }
 0xdf4   :  { %v1925_v9 = vpop.permute.xlu1 %1924 }
 0xdf5   :  { %v3560_v52 = vadd.f32 %v1925_v9, %v1915_v6 }
 0xdf7   :  { %2777 = vtanh.f32 %v3560_v52 }
 0xdf8   :  { %v1906_v53 = vpop.permute.xlu1 %1905  ;;  %2779 = vpow2.f32 %v2606_v17 }
 0xdf9   :  { %v1907_v19 = vrot.slane %v1906_v53, 1 }
 0xdfb   :  { %v2604_v16 = vmul.f32 -1.442695, %v1907_v19 }
 0xdfd   :  { %2781 = vpow2.f32 %v2604_v16 }
 0xe00   :  { %v2776_v12 = vpop.eup %2775 }
 0xe01   :  { %1967 = vrot.lane.b32.xlu0 %v2776_v12, %s2985_s18 }
 0xe04   :  { %v2778_v13 = vpop.eup %2777 }
 0xe05   :  { %1930 = vrot.lane.b32.xlu0 %v2778_v13, %s2985_s18  ;;  %v2780_v7 = vpop.eup %2779 }
 0xe06   :  { %v1949_v11 = vadd.f32 1.0, %v2780_v7 }
 0xe08   :  { %2783 = vrcp.f32 %v1949_v11 }
 0xe0a   :  { %v2782_v15 = vpop.eup %2781 }
 0xe0b   :  { %v1912_v21 = vadd.f32 1.0, %v2782_v15 }
 0xe0d   :  { %2785 = vrcp.f32 %v1912_v21 }
 0xe15   :  { %v2784_v22 = vpop.eup %2783 }
 0xe1a   :  { %v2786_v14 = vpop.eup %2785 }
 0xe73   :  { %v1968_v23 = vpop.permute.xlu0 %1967 }
 0xe74   :  { %v3565_v25 = vmul.f32 %v2784_v22, %v1968_v23 }
 0xe76   :  { %2612 = vmatmul.mubr.msk.f32.vlgmr.msra.gmra.mxu1 %vm125_vm1, %v3565_v25 }
 0xe77   :  { %v1931_v26 = vpop.permute.xlu0 %1930  ;;  %2621 = vmatpush1.msk.msra.mxu1 %vm129_vm0, %v3387_v62  ;;  %2416 = vmatprep.mubr.f32.mxu1 %v2979_v0 }
 0xe78   :  { %v3572_v27 = vmul.f32 %v2786_v14, %v1931_v26  ;;  %2372 = vmatprep.subr.mxu1 %v3392_v32 }
 0xe79   :  { %2373 = vmatpush1.msra.mxu1 %v3395_v33 }
 0xe7a   :  { %2609 = vmatmul.mubr.msk.f32.vlgmr.msra.gmra.mxu0 %vm125_vm1, %v3572_v27  ;;  %2374 = vmatprep.subr.mxu1 %v3400_v34 }
 0xe7b   :  { %2618 = vmatpush1.msk.msra.mxu0 %vm129_vm0, %v3403_v36  ;;  %2375 = vmatpush1.msra.mxu1 %v3407_v37 }
 0xe7c   :  { %2279 = vmatprep.subr.mxu0 %v3410_v38  ;;  %2376 = vmatprep.subr.mxu1 %v3413_v39 }
 0xe7d   :  { %2280 = vmatpush1.msra.mxu0 %v3416_v40  ;;  %2377 = vmatpush1.msra.mxu1 %v3419_v41  ;;  %v2077_v40 = vld [vmem:[#allocation3 + $0x1] ss:$8 sm:$0x3] }
 0xe7e   :  { %2281 = vmatprep.subr.mxu0 %v3422_v35  ;;  %2378 = vmatprep.subr.mxu1 %v3425_v42  ;;  %v1982_v42 = vld [vmem:[#allocation2 + $0x6] ss:$8 sm:$0x3] }
 0xe7f   :  { %2282 = vmatpush1.msra.mxu0 %v3428_v43  ;;  %2379 = vmatpush1.msra.mxu1 %v3431_v44 }
 0xe80   :  { %2283 = vmatprep.subr.mxu0 %v3434_v29  ;;  %2380 = vmatprep.subr.mxu1 %v3437_v45 }
 0xe81   :  { %2284 = vmatpush1.msra.mxu0 %v3440_v46  ;;  %2381 = vmatpush1.msra.mxu1 %v3443_v47 }
 0xe82   :  { %2285 = vmatprep.subr.mxu0 %v3446_v48  ;;  %2382 = vmatprep.subr.mxu1 %v3527_v58 }
 0xe83   :  { %2286 = vmatpush1.msra.mxu0 %v3450_v49  ;;  %2383 = vmatpush1.msra.mxu1 %v3531_v59 }
 0xe84   :  { %2287 = vmatprep.subr.mxu0 %v3454_v50  ;;  %2323 = vmatprep.mubr.f32.mxu0 %v2979_v0 }
 0xe85   :  { %2288 = vmatpush1.msra.mxu0 %v3458_v51 }
 0xe86   :  { %2289 = vmatprep.subr.mxu0 %v3465_v56 }
 0xe87   :  { %2290 = vmatpush1.msra.mxu0 %v3468_v57 }
 0xf36   :  { %v2146_v62 = vpop.f32.mrf.mxu1 }
 0xf38   :  { %v2148_v32 = vpop.f32.mrf.mxu1 }
 0xf39   :  { %v2153_v33 = vcombine.low %v2146_v62, %v2148_v32 }
 0xf3a   :  { %v2052_v34 = vpop.f32.mrf.mxu0 }
 0xf3b   :  { %v2160_v36 = vrot.slane %v2153_v33, %v3174_v18 }
 0xf3c   :  { %v2054_v37 = vpop.f32.mrf.mxu0 }
 0xf3d   :  { %v2167_v38 = vrot.slane %v2160_v36, %v3174_v18  ;;  %v2059_v39 = vcombine.low %v2052_v34, %v2054_v37 }
 0xf3f   :  { %v2169_v41 = vadd.f32 %v2167_v38, %v2077_v40  ;;  %v2066_v0 = vrot.slane %v2059_v39, %v3174_v18 }
 0xf41   :  { %2787 = vtanh.f32 %v2169_v41  ;;  %v2073_v35 = vrot.slane %v2066_v0, %v3174_v18  ;;  %v2615_v45 = vmul.f32 -1.442695, %v2169_v41  ;;  %v2349_v0 = vld [vmem:[#allocation3] ss:$8 sm:$0x3] }
 0xf43   :  { %v2075_v43 = vadd.f32 %v2073_v35, %v1982_v42 }
 0xf45   :  { %2789 = vtanh.f32 %v2075_v43  ;;  %v2613_v46 = vmul.f32 -1.442695, %v2075_v43 }
 0xf46   :  { %2791 = vpow2.f32 %v2615_v45 }
 0xf47   :  { %2793 = vpow2.f32 %v2613_v46 }
 0xf4e   :  { %v2788_v44 = vpop.eup %2787 }
 0xf4f   :  { %2227 = vrot.lane.b32.xlu1 %v2788_v44, %s2982_s15  ;;  %v2255_v44 = vld [vmem:[#allocation2 + $0x7] ss:$8 sm:$0x3] }
 0xf52   :  { %v2790_v29 = vpop.eup %2789 }
 0xf53   :  { %2190 = vrot.lane.b32.xlu0 %v2790_v29, %s2982_s15  ;;  %v2792_v47 = vpop.eup %2791 }
 0xf54   :  { %v2210_v48 = vadd.f32 1.0, %v2792_v47  ;;  %v2794_v49 = vpop.eup %2793 }
 0xf55   :  { %v2173_v50 = vadd.f32 1.0, %v2794_v49 }
 0xf56   :  { %2795 = vrcp.f32 %v2210_v48 }
 0xf57   :  { %2215 = vrot.lane.b32.xlu0 %v2169_v41, %s2983_s16  ;;  %2797 = vrcp.f32 %v2173_v50 }
 0xf63   :  { %v2796_v57 = vpop.eup %2795 }
 0xf64   :  { %v2798_v54 = vpop.eup %2797  ;;  %v2225_v2 = vmul.f32 %v2796_v57, %v3556_v5 }
 0xf65   :  { %v2188_v9 = vmul.f32 %v2798_v54, %v3560_v52 }
 0xfc1   :  { %v2228_v51 = vpop.permute.xlu1 %2227 }
 0xfc2   :  { %v2229_v56 = vrot.slane %v2228_v51, 1 }
 0xfc4   :  { %v2230_v58 = vsel %vm552_vm4, %v2228_v51, %v2229_v56 }
 0xfc5   :  { %v2232_v59 = vmul.f32 %v2796_v57, %v2230_v58  ;;  %v2191_v61 = vpop.permute.xlu0 %2190 }
 0xfc6   :  { %v2192_v31 = vrot.slane %v2191_v61, 1 }
 0xfc7   :  { %2234 = vrot.lane.b32.xlu1 %v2232_v59, %s2984_s17 }
 0xfc8   :  { %v2193_v55 = vsel %vm552_vm4, %v2191_v61, %v2192_v31 }
 0xfc9   :  { %v2195_v63 = vmul.f32 %v2798_v54, %v2193_v55  ;;  %v2216_v53 = vpop.permute.xlu0 %2215 }
 0xfca   :  { %v2217_v5 = vrot.slane %v2216_v53, 1 }
 0xfcb   :  { %2197 = vrot.lane.b32.xlu1 %v2195_v63, %s2984_s17 }
 0xfcc   :  { %v2616_v19 = vmul.f32 -1.442695, %v2217_v5 }
 0xfcf   :  { %2178 = vrot.lane.b32.xlu1 %v2075_v43, %s2983_s16 }
0x1039   :  { %v2235_v3 = vpop.permute.xlu1 %2234 }
0x103a   :  { %v3616_v6 = vadd.f32 %v2235_v3, %v2225_v2  ;;  %v610_v3 = vrot.slane %v3197_v8, %v3167_v60 }
0x103c   :  { %2799 = vtanh.f32 %v3616_v6 }
0x103d   :  { %v2198_v12 = vpop.permute.xlu1 %2197 }
0x103e   :  { %v3620_v13 = vadd.f32 %v2198_v12, %v2188_v9  ;;  %v1157_v9 = vrot.slane %v3321_v24, %v3167_v60  ;;  %v1703_v12 = vrot.slane %v3497_v20, %v3167_v60 }
0x1040   :  { %2801 = vtanh.f32 %v3620_v13 }
0x1041   :  { %v2179_v17 = vpop.permute.xlu1 %2178  ;;  %2803 = vpow2.f32 %v2616_v19 }
0x1042   :  { %v2180_v16 = vrot.slane %v2179_v17, 1 }
0x1044   :  { %v2614_v7 = vmul.f32 -1.442695, %v2180_v16 }
0x1046   :  { %2805 = vpow2.f32 %v2614_v7 }
0x1049   :  { %v2800_v10 = vpop.eup %2799 }
0x104a   :  { %2240 = vrot.lane.b32.xlu0 %v2800_v10, %s2985_s18 }
0x104d   :  { %v2802_v4 = vpop.eup %2801 }
0x104e   :  { %2203 = vrot.lane.b32.xlu0 %v2802_v4, %s2985_s18  ;;  %v2804_v52 = vpop.eup %2803 }
0x104f   :  { %v2222_v11 = vadd.f32 1.0, %v2804_v52 }
0x1051   :  { %2807 = vrcp.f32 %v2222_v11 }
0x1053   :  { %v2806_v15 = vpop.eup %2805 }
0x1054   :  { %v2185_v21 = vadd.f32 1.0, %v2806_v15  ;;  %v1430_v15 = vrot.slane %v3383_v28, %v3167_v60 }
0x1056   :  { %2809 = vrcp.f32 %v2185_v21 }
0x105e   :  { %v2808_v22 = vpop.eup %2807 }
0x1063   :  { %v2810_v26 = vpop.eup %2809 }
0x10bc   :  { %v2241_v23 = vpop.permute.xlu0 %2240 }
0x10bd   :  { %v2243_v14 = vmul.f32 %v2808_v22, %v2241_v23 }
0x10bf   :  { %2622 = vmatmul.mubr.msk.f32.vlgmr.msra.gmra.mxu1 %vm125_vm1, %v2243_v14  ;;  %v2249_v10 = vrot.slane %v2243_v14, %v3167_v60 }
0x10c0   :  { %v2204_v62 = vpop.permute.xlu0 %2203 }
0x10c1   :  { %v3626_v32 = vmul.f32 %v2810_v26, %v2204_v62 }
0x10c3   :  { %2619 = vmatmul.mubr.msk.f32.vlgmr.msra.gmra.mxu0 %vm125_vm1, %v3626_v32 }
0x117f   :  { %v2418_v33 = vpop.f32.mrf.mxu1 }
0x1181   :  { %v2420_v34 = vpop.f32.mrf.mxu1 }
0x1182   :  { %v2425_v36 = vcombine.low %v2418_v33, %v2420_v34 }
0x1183   :  { %v2325_v37 = vpop.f32.mrf.mxu0 }
0x1184   :  { %v2432_v38 = vrot.slane %v2425_v36, %v3174_v18 }
0x1185   :  { %v2327_v39 = vpop.f32.mrf.mxu0 }
0x1186   :  { %v2439_v40 = vrot.slane %v2432_v38, %v3174_v18  ;;  %v2332_v41 = vcombine.low %v2325_v37, %v2327_v39 }
0x1188   :  { %v2441_v35 = vadd.f32 %v2439_v40, %v2349_v0  ;;  %v2339_v42 = vrot.slane %v2332_v41, %v3174_v18 }
0x118a   :  { %2811 = vtanh.f32 %v2441_v35  ;;  %v2346_v43 = vrot.slane %v2339_v42, %v3174_v18  ;;  %v2625_v47 = vmul.f32 -1.442695, %v2441_v35 }
0x118c   :  { %v2348_v29 = vadd.f32 %v2346_v43, %v2255_v44 }
0x118e   :  { %2813 = vtanh.f32 %v2348_v29  ;;  %v2623_v48 = vmul.f32 -1.442695, %v2348_v29 }
0x118f   :  { %2815 = vpow2.f32 %v2625_v47 }
0x1190   :  { %2817 = vpow2.f32 %v2623_v48 }
0x1197   :  { %v2812_v45 = vpop.eup %2811 }
0x1198   :  { %2499 = vrot.lane.b32.xlu1 %v2812_v45, %s2982_s15 }
0x119b   :  { %v2814_v46 = vpop.eup %2813 }
0x119c   :  { %2462 = vrot.lane.b32.xlu0 %v2814_v46, %s2982_s15  ;;  %v2816_v49 = vpop.eup %2815 }
0x119d   :  { %v2482_v50 = vadd.f32 1.0, %v2816_v49  ;;  %v2818_v51 = vpop.eup %2817 }
0x119e   :  { %v2445_v18 = vadd.f32 1.0, %v2818_v51 }
0x119f   :  { %2819 = vrcp.f32 %v2482_v50 }
0x11a0   :  { %2487 = vrot.lane.b32.xlu0 %v2441_v35, %s2983_s16  ;;  %2821 = vrcp.f32 %v2445_v18 }
0x11ac   :  { %v2820_v58 = vpop.eup %2819 }
0x11ad   :  { %v2822_v55 = vpop.eup %2821  ;;  %v2497_v4 = vmul.f32 %v2820_v58, %v3616_v6 }
0x11ae   :  { %v2460_v5 = vmul.f32 %v2822_v55, %v3620_v13  ;;  %v884_v13 = vrot.slane %v3259_v1, %v3167_v60 }
0x120a   :  { %v2500_v56 = vpop.permute.xlu1 %2499 }
0x120b   :  { %v2501_v57 = vrot.slane %v2500_v56, 1 }
0x120d   :  { %v2502_v59 = vsel %vm552_vm4, %v2500_v56, %v2501_v57 }
0x120e   :  { %v2504_v61 = vmul.f32 %v2820_v58, %v2502_v59  ;;  %v2463_v31 = vpop.permute.xlu0 %2462 }
0x120f   :  { %v2464_v54 = vrot.slane %v2463_v31, 1 }
0x1210   :  { %2506 = vrot.lane.b32.xlu1 %v2504_v61, %s2984_s17 }
0x1211   :  { %v2465_v63 = vsel %vm552_vm4, %v2463_v31, %v2464_v54 }
0x1212   :  { %v2467_v2 = vmul.f32 %v2822_v55, %v2465_v63  ;;  %v2488_v21 = vpop.permute.xlu0 %2487 }
0x1213   :  { %v2489_v22 = vrot.slane %v2488_v21, 1 }
0x1214   :  { %2469 = vrot.lane.b32.xlu1 %v2467_v2, %s2984_s17 }
0x1215   :  { %v2626_v23 = vmul.f32 -1.442695, %v2489_v22 }
0x1218   :  { %2450 = vrot.lane.b32.xlu1 %v2348_v29, %s2983_s16 }
0x121c   :  { %611 = vrot.lane.b32.xlu1 %v610_v3, %s2984_s17 }
0x1220   :  { %1158 = vrot.lane.b32.xlu1 %v1157_v9, %s2984_s17 }
0x1224   :  { %1704 = vrot.lane.b32.xlu1 %v1703_v12, %s2984_s17 }
0x1228   :  { %2250 = vrot.lane.b32.xlu1 %v2249_v10, %s2984_s17 }
0x1282   :  { %v2507_v53 = vpop.permute.xlu1 %2506 }
0x1283   :  { %v2509_v8 = vadd.f32 %v2507_v53, %v2497_v4 }
0x1285   :  { %2823 = vtanh.f32 %v2509_v8 }
0x1286   :  { %v2470_v17 = vpop.permute.xlu1 %2469 }
0x1287   :  { %v2472_v24 = vadd.f32 %v2470_v17, %v2460_v5 }
0x1289   :  { %2825 = vtanh.f32 %v2472_v24 }
0x128a   :  { %v2451_v19 = vpop.permute.xlu1 %2450  ;;  %2827 = vpow2.f32 %v2626_v23 }
0x128b   :  { %v2452_v14 = vrot.slane %v2451_v19, 1 }
0x128d   :  { %v2624_v1 = vmul.f32 -1.442695, %v2452_v14 }
0x128e   :  { %v612_v16 = vpop.permute.xlu1 %611 }
0x128f   :  { %615 = vst.msk [vmem:[#allocation12 + $0x7] sm:$0x1] %vm614_vm6, %v612_v16  ;;  %2829 = vpow2.f32 %v2624_v1 }
0x1292   :  { %v2824_v20 = vpop.eup %2823  ;;  %v1159_v7 = vpop.permute.xlu1 %1158 }
0x1293   :  { %1161 = vst.msk [vmem:[#allocation12 + $0x5] sm:$0x1] %vm614_vm6, %v1159_v7  ;;  %2512 = vrot.lane.b32.xlu0 %v2824_v20, %s2985_s18 }
0x1294   :  { %1971 = vst.msk [vmem:[#allocation12 + $0x5] sm:$0x1] %vm604_vm5, %v3572_v27  ;;  %v1976_v27 = vrot.slane %v3565_v25, %v3167_v60 }
0x1296   :  { %v2826_v6 = vpop.eup %2825  ;;  %v1705_v52 = vpop.permute.xlu1 %1704 }
0x1297   :  { %1707 = vst.msk [vmem:[#allocation12 + $0x3] sm:$0x1] %vm614_vm6, %v1705_v52  ;;  %2475 = vrot.lane.b32.xlu0 %v2826_v6, %s2985_s18  ;;  %v2828_v26 = vpop.eup %2827 }
0x1298   :  { %v2494_v62 = vadd.f32 1.0, %v2828_v26 }
0x129a   :  { %v2251_v11 = vpop.permute.xlu1 %2250  ;;  %2831 = vrcp.f32 %v2494_v62 }
0x129b   :  { %2253 = vst.msk [vmem:[#allocation12 + $0x1] sm:$0x1] %vm614_vm6, %v2251_v11  ;;  %885 = vrot.lane.b32.xlu0 %v884_v13, %s2984_s17 }
0x129c   :  { %v2830_v33 = vpop.eup %2829 }
0x129d   :  { %v2457_v34 = vadd.f32 1.0, %v2830_v33 }
0x129f   :  { %1431 = vrot.lane.b32.xlu0 %v1430_v15, %s2984_s17  ;;  %2833 = vrcp.f32 %v2457_v34 }
0x12a3   :  { %1977 = vrot.lane.b32.xlu0 %v1976_v27, %s2984_s17 }
0x12a7   :  { %v2832_v28 = vpop.eup %2831 }
0x12ac   :  { %v2834_v38 = vpop.eup %2833 }
0x1305   :  { %v2513_v36 = vpop.permute.xlu0 %2512 }
0x1306   :  { %v2515_v37 = vmul.f32 %v2832_v28, %v2513_v36 }
0x1308   :  { %v2521_v25 = vrot.slane %v2515_v37, %v3167_v60 }
0x1309   :  { %v2476_v39 = vpop.permute.xlu0 %2475 }
0x130a   :  { %v2478_v40 = vmul.f32 %v2834_v38, %v2476_v39  ;;  %2522 = vrot.lane.b32.xlu0 %v2521_v25, %s2984_s17 }
0x130c   :  { %2516 = vst.msk [vmem:[#allocation12 + $0x7] sm:$0x1] %vm604_vm5, %v2478_v40 }
0x130d   :  { %v886_v41 = vpop.permute.xlu0 %885 }
0x130e   :  { %888 = vst.msk [vmem:[#allocation12 + $0x6] sm:$0x1] %vm614_vm6, %v886_v41 }
0x130f   :  { %2244 = vst.msk [vmem:[#allocation12 + $0x6] sm:$0x1] %vm604_vm5, %v3626_v32 }
0x1311   :  { %v1432_v0 = vpop.permute.xlu0 %1431 }
0x1312   :  { %1434 = vst.msk [vmem:[#allocation12 + $0x4] sm:$0x1] %vm614_vm6, %v1432_v0 }
0x1313   :  { %1698 = vst.msk [vmem:[#allocation12 + $0x4] sm:$0x1] %vm604_vm5, %v3504_v30 }
0x1315   :  { %v1978_v60 = vpop.permute.xlu0 %1977 }
0x1316   :  { %1980 = vst.msk [vmem:[#allocation12 + $0x2] sm:$0x1] %vm614_vm6, %v1978_v60 }
0x137c   :  { %v2523_v35 = vpop.permute.xlu0 %2522 }
0x137d   :  { %2525 = vst.msk [vmem:[#allocation12] sm:$0x1] %vm614_vm6, %v2523_v35 }
0x137e   :  { %2954 = shalt.err (!%p2951_p10)
}
0x137f   :  { %2535 = dma.vmem_to_hbm [thread:$0]  %s2533_s20, 128, %s3691_s5, [#allocation6]  }
0x1380   :  { %2969 = dma.done.wait [#allocation6], 128  }
0x1381   :  { %2970 = vsyncadd [#allocation6], 4294967168 }
0x1382   :  { %2539 = vsyncpa [#allocation5], 1 }
0x1383   :  { %2540 = vsyncpa [#allocation8], 1 }
0x1384   :  { %2541 = vsyncpa [#allocation11], 1 }
0x1385   :  { %2542 = vsyncpa [#allocation6], 1 }

</bundles_post_ra>
